<compile_context>
chip_gen: v7x
topology: tpu7x:2x2x1
jax: 0.10.0
libtpu: 0.0.40
codegen_flags: <defaults>
</compile_context>

<pallas_src>
import jax
import jax.numpy as jnp
from jax.experimental import pallas as pl
from jax.experimental.pallas import tpu as pltpu

INPUT_SIZE = 28 * 28     # 784, forced by x.view(-1, 28*28)
HIDDEN_SIZE = 256
NUM_CLASSES = 10

C_PAD = 128              # lane-dense fc2 output slab (10 logits padded to 128)


def _round_up(n, m):
    return ((n + m - 1) // m) * m


def _mlp_kernel(x_ref, w1_ref, b1_ref, w2_ref, b2_ref, fc1_ref, fc2_ref):
    # x arrives in the caller's dtype (f32); cast to bf16 on the VPU (free in
    # this mem-bound regime), accumulate in f32 on the MXU, store out_dtype.
    x = x_ref[...].astype(w1_ref.dtype)                                  # (TB, K) bf16
    fc1 = jnp.dot(x, w1_ref[...], preferred_element_type=jnp.float32)    # (TB, H) f32
    fc1 = fc1 + b1_ref[...]
    fc1_ref[...] = fc1.astype(fc1_ref.dtype)
    h = jnp.maximum(fc1, 0.0).astype(w2_ref.dtype)                       # bf16 for 2nd GEMM
    fc2 = jnp.dot(h, w2_ref[...], preferred_element_type=jnp.float32)    # (TB, C_PAD) f32
    fc2_ref[...] = (fc2 + b2_ref[...]).astype(fc2_ref.dtype)


def prepare_mlp_params(w1, b1, w2, b2):
    """One-time parameter layout prep (hoisted out of the per-call path).

    w1: (784, H), b1: (H,) or (1, H), w2: (H, C), b2: (C,) or (1, C), f32.
    Weights are stored pre-transposed as (in_features, out_features).
    Returns (w1 bf16, b1 f32 (1,H), w2 bf16 zero-padded to (H, C_PAD),
    b2 f32 zero-padded to (1, C_PAD)).
    """
    _, H = w1.shape
    C = w2.shape[1]
    w1_p = w1.astype(jnp.bfloat16)
    b1_p = b1.astype(jnp.float32).reshape(1, H)
    w2_p = jnp.zeros((H, C_PAD), jnp.bfloat16).at[:, :C].set(w2.astype(jnp.bfloat16))
    b2_p = jnp.zeros((1, C_PAD), jnp.float32).at[:, :C].set(
        b2.astype(jnp.float32).reshape(1, C))
    return w1_p, b1_p, w2_p, b2_p


def mlp_forward(x, w1_p, b1_p, w2_p, b2_p, *, num_classes=NUM_CLASSES,
                tb=1024, out_dtype=jnp.float32):
    """Forward of `mlp`: returns (fc1 pre-activation, fc2 logits).

    x: (B, 784) f32 (pass images already flattened, like x.view(-1, 784)).
    w1_p/b1_p/w2_p/b2_p: outputs of prepare_mlp_params.
    """
    B, K = x.shape
    H = w1_p.shape[1]

    # Batch tile: multiple of 128 (full bf16 sublane packs / lane-dense
    # stores). Clamp for tiny batches; cap so the grid has >= 2 steps whenever
    # B allows it, so "parallel" shards the batch across v7x's 2 TensorCores.
    tb = min(tb, _round_up(max(B, 1), 128))
    if B > 128:
        tb = min(tb, max(128, _round_up(pl.cdiv(B, 2), 128)))
    grid = (pl.cdiv(B, tb),)   # ragged last tile: Pallas masks OOB writes

    fc1_out, fc2_out = pl.pallas_call(
        _mlp_kernel,
        out_shape=(
            jax.ShapeDtypeStruct((B, H), out_dtype),
            jax.ShapeDtypeStruct((B, C_PAD), out_dtype),
        ),
        grid=grid,
        in_specs=[
            pl.BlockSpec((tb, K), lambda i: (i, 0)),       # x tile: pipelined, no copy
            pl.BlockSpec((K, H), lambda i: (0, 0)),        # w1: VMEM-resident
            pl.BlockSpec((1, H), lambda i: (0, 0)),        # b1: VMEM-resident
            pl.BlockSpec((H, C_PAD), lambda i: (0, 0)),    # w2: VMEM-resident
            pl.BlockSpec((1, C_PAD), lambda i: (0, 0)),    # b2: VMEM-resident
        ],
        out_specs=(
            pl.BlockSpec((tb, H), lambda i: (i, 0)),
            pl.BlockSpec((tb, C_PAD), lambda i: (i, 0)),
        ),
        compiler_params=pltpu.CompilerParams(
            dimension_semantics=("parallel",),   # megacore sharding on v7x
            vmem_limit_bytes=32 << 20,           # fits v5e/v6e and v7x's 64 MiB
        ),
    )(x, w1_p, b1_p, w2_p, b2_p)

    return fc1_out, fc2_out[:, :num_classes]


def init_linear_params(key, in_features, out_features):
    """Deterministic init matching nn.Linear's U(-1/sqrt(in), 1/sqrt(in))."""
    k_w, k_b = jax.random.split(key)
    bound = 1.0 / jnp.sqrt(jnp.float32(in_features))
    # stored transposed: (in_features, out_features)
    w = jax.random.uniform(k_w, (in_features, out_features), jnp.float32,
                           minval=-bound, maxval=bound)
    b = jax.random.uniform(k_b, (1, out_features), jnp.float32,
                           minval=-bound, maxval=bound)
    return w, b


def reference_forward_f32(x, w1, b1, w2, b2):
    fc1 = x @ w1 + b1
    fc2 = jnp.maximum(fc1, 0.0) @ w2 + b2
    return fc1, fc2


def reference_forward_bf16(x, w1, b1, w2, b2):
    """Same numerics as the kernel: bf16 MXU inputs, f32 accumulation."""
    xb = x.astype(jnp.bfloat16)
    w1b = w1.astype(jnp.bfloat16)
    w2b = w2.astype(jnp.bfloat16)
    fc1 = jnp.dot(xb, w1b, preferred_element_type=jnp.float32) + b1
    h = jnp.maximum(fc1, 0.0).astype(jnp.bfloat16)
    fc2 = jnp.dot(h, w2b, preferred_element_type=jnp.float32) + b2
    return fc1, fc2


if __name__ == "__main__":
    key = jax.random.PRNGKey(0)
    k_x, k_x2, k_fc1, k_fc2 = jax.random.split(key, 4)

    w1, b1 = init_linear_params(k_fc1, INPUT_SIZE, HIDDEN_SIZE)
    w2, b2 = init_linear_params(k_fc2, HIDDEN_SIZE, NUM_CLASSES)

    # One-time parameter layout prep (not part of the per-forward cost).
    params = prepare_mlp_params(w1, b1, w2, b2)
    params = jax.block_until_ready(params)

    # --- case 1: MNIST-style NCHW input, tiny batch (B=2) -------------------
    B = 2
    x_img = jax.random.normal(k_x, (B, 1, 28, 28), jnp.float32)
    x = x_img.reshape(-1, INPUT_SIZE)                      # the .view(-1, 784) glue

    fc1_out, fc2_out = mlp_forward(x, *params)
    jax.block_until_ready((fc1_out, fc2_out))

    assert fc1_out.shape == (B, HIDDEN_SIZE) and fc2_out.shape == (B, NUM_CLASSES)
    # Tight check vs a reference with identical bf16-input / f32-acc math.
    rb1, rb2 = reference_forward_bf16(x, w1, b1, w2, b2)
    assert jnp.allclose(fc1_out, rb1, atol=1e-3, rtol=1e-3)
    assert jnp.allclose(fc2_out, rb2, atol=1e-3, rtol=1e-3)
    # Loose check vs the pure-f32 module semantics (bf16 MXU inputs => ~1e-2).
    rf1, rf2 = reference_forward_f32(x, w1, b1, w2, b2)
    assert jnp.allclose(fc1_out, rf1, atol=5e-2, rtol=5e-2)
    assert jnp.allclose(fc2_out, rf2, atol=5e-2, rtol=5e-2)

    # --- case 2: batch not a multiple of the tile (multi-step ragged grid) --
    B2 = 300
    x2 = jax.random.normal(k_x2, (B2, INPUT_SIZE), jnp.float32)
    fc1_b, fc2_b = mlp_forward(x2, *params, tb=128)
    jax.block_until_ready((fc1_b, fc2_b))
    assert fc1_b.shape == (B2, HIDDEN_SIZE) and fc2_b.shape == (B2, NUM_CLASSES)
    rb1_2, rb2_2 = reference_forward_bf16(x2, w1, b1, w2, b2)
    assert jnp.allclose(fc1_b, rb1_2, atol=1e-3, rtol=1e-3)
    assert jnp.allclose(fc2_b, rb2_2, atol=1e-3, rtol=1e-3)

    # --- case 3: default (large) tile path with multi-step grid -------------
    B3 = 300
    fc1_c, fc2_c = mlp_forward(x2, *params)                # default tb=1024 -> clamped
    jax.block_until_ready((fc1_c, fc2_c))
    assert fc1_c.shape == (B3, HIDDEN_SIZE) and fc2_c.shape == (B3, NUM_CLASSES)
    assert jnp.allclose(fc1_c, rb1_2, atol=1e-3, rtol=1e-3)
    assert jnp.allclose(fc2_c, rb2_2, atol=1e-3, rtol=1e-3)

    print("KERNEL_OK")
</pallas_src>

<mosaic_0001>
module attributes {stable_mosaic.version = 11 : i64} {
  func.func @_mlp_kernel(%arg0: i32, %arg1: memref<128x784xf32, #tpu.memory_space<vmem>>, %arg2: memref<784x256xbf16, #tpu.memory_space<vmem>>, %arg3: memref<1x256xf32, #tpu.memory_space<vmem>>, %arg4: memref<256x128xbf16, #tpu.memory_space<vmem>>, %arg5: memref<1x128xf32, #tpu.memory_space<vmem>>, %arg6: memref<128x256xf32, #tpu.memory_space<vmem>>, %arg7: memref<128x128xf32, #tpu.memory_space<vmem>>) attributes {dimension_semantics = [#tpu.dimension_semantics<parallel>], iteration_bounds = array<i64: 1>, scalar_prefetch = 0 : i64, scratch_operands = 0 : i64, tpu.core_type = #tpu.core_type<tc>, window_params = [{transform_indices = @transform_0, window_bounds = array<i64: 128, 784>}, {pipeline_mode = #tpu.pipeline_mode<synchronous>, transform_indices = @transform_1, window_bounds = array<i64: 784, 256>}, {pipeline_mode = #tpu.pipeline_mode<synchronous>, transform_indices = @transform_2, window_bounds = array<i64: 1, 256>}, {pipeline_mode = #tpu.pipeline_mode<synchronous>, transform_indices = @transform_3, window_bounds = array<i64: 256, 128>}, {pipeline_mode = #tpu.pipeline_mode<synchronous>, transform_indices = @transform_4, window_bounds = array<i64: 1, 128>}, {transform_indices = @transform_5, window_bounds = array<i64: 128, 256>}, {transform_indices = @transform_6, window_bounds = array<i64: 128, 128>}]} {
    %c0 = arith.constant 0 : index
    %c0_0 = arith.constant 0 : index
    %0 = vector.load %arg1[%c0, %c0_0] : memref<128x784xf32, #tpu.memory_space<vmem>>, vector<128x784xf32>
    %1 = arith.truncf %0 : vector<128x784xf32> to vector<128x784xbf16>
    %c0_1 = arith.constant 0 : index
    %c0_2 = arith.constant 0 : index
    %2 = vector.load %arg2[%c0_1, %c0_2] : memref<784x256xbf16, #tpu.memory_space<vmem>>, vector<784x256xbf16>
    %cst = arith.constant dense<0.000000e+00> : vector<128x256xf32>
    %3 = tpu.matmul %1, %2, %cst {dimension_numbers = #tpu.dot_dimension_numbers<[1], [0], [0], [1], [0, 0, 1, 1], [], []>} : vector<128x784xbf16>, vector<784x256xbf16>, vector<128x256xf32> -> vector<128x256xf32>
    %c0_3 = arith.constant 0 : index
    %c0_4 = arith.constant 0 : index
    %4 = vector.load %arg3[%c0_3, %c0_4] : memref<1x256xf32, #tpu.memory_space<vmem>>, vector<1x256xf32>
    %5 = vector.broadcast %4 : vector<1x256xf32> to vector<128x256xf32>
    %6 = arith.addf %3, %5 : vector<128x256xf32>
    %c0_5 = arith.constant 0 : index
    %c0_6 = arith.constant 0 : index
    %7 = vector.load %arg6[%c0_5, %c0_6] : memref<128x256xf32, #tpu.memory_space<vmem>>, vector<128x256xf32>
    tpu.vector_store %arg6[%c0_5, %c0_6], %6 {strides = array<i32>} : memref<128x256xf32, #tpu.memory_space<vmem>>, vector<128x256xf32>,
    %cst_7 = arith.constant 0.000000e+00 : f32
    %8 = vector.broadcast %cst_7 : f32 to vector<128x256xf32>
    %9 = arith.maximumf %6, %8 : vector<128x256xf32>
    %10 = arith.truncf %9 : vector<128x256xf32> to vector<128x256xbf16>
    %c0_8 = arith.constant 0 : index
    %c0_9 = arith.constant 0 : index
    %11 = vector.load %arg4[%c0_8, %c0_9] : memref<256x128xbf16, #tpu.memory_space<vmem>>, vector<256x128xbf16>
    %cst_10 = arith.constant dense<0.000000e+00> : vector<128x128xf32>
    %12 = tpu.matmul %10, %11, %cst_10 {dimension_numbers = #tpu.dot_dimension_numbers<[1], [0], [0], [1], [0, 0, 1, 1], [], []>} : vector<128x256xbf16>, vector<256x128xbf16>, vector<128x128xf32> -> vector<128x128xf32>
    %c0_11 = arith.constant 0 : index
    %c0_12 = arith.constant 0 : index
    %13 = vector.load %arg5[%c0_11, %c0_12] : memref<1x128xf32, #tpu.memory_space<vmem>>, vector<1x128xf32>
    %14 = vector.broadcast %13 : vector<1x128xf32> to vector<128x128xf32>
    %15 = arith.addf %12, %14 : vector<128x128xf32>
    %c0_13 = arith.constant 0 : index
    %c0_14 = arith.constant 0 : index
    %16 = vector.load %arg7[%c0_13, %c0_14] : memref<128x128xf32, #tpu.memory_space<vmem>>, vector<128x128xf32>
    tpu.vector_store %arg7[%c0_13, %c0_14], %15 {strides = array<i32>} : memref<128x128xf32, #tpu.memory_space<vmem>>, vector<128x128xf32>,
    return
  }
  func.func @transform_0(%arg0: i32) -> (i32, i32) {
    %c0_i32 = arith.constant 0 : i32
    %c0_i32_0 = arith.constant 0 : i32
    return %arg0, %c0_i32 : i32, i32
  }
  func.func @transform_1(%arg0: i32) -> (i32, i32) {
    %c0_i32 = arith.constant 0 : i32
    %c0_i32_0 = arith.constant 0 : i32
    %c0_i32_1 = arith.constant 0 : i32
    return %c0_i32, %c0_i32_0 : i32, i32
  }
  func.func @transform_2(%arg0: i32) -> (i32, i32) {
    %c0_i32 = arith.constant 0 : i32
    %c0_i32_0 = arith.constant 0 : i32
    %c0_i32_1 = arith.constant 0 : i32
    return %c0_i32, %c0_i32_0 : i32, i32
  }
  func.func @transform_3(%arg0: i32) -> (i32, i32) {
    %c0_i32 = arith.constant 0 : i32
    %c0_i32_0 = arith.constant 0 : i32
    %c0_i32_1 = arith.constant 0 : i32
    return %c0_i32, %c0_i32_0 : i32, i32
  }
  func.func @transform_4(%arg0: i32) -> (i32, i32) {
    %c0_i32 = arith.constant 0 : i32
    %c0_i32_0 = arith.constant 0 : i32
    %c0_i32_1 = arith.constant 0 : i32
    return %c0_i32, %c0_i32_0 : i32, i32
  }
  func.func @transform_5(%arg0: i32) -> (i32, i32) {
    %c0_i32 = arith.constant 0 : i32
    %c0_i32_0 = arith.constant 0 : i32
    return %arg0, %c0_i32 : i32, i32
  }
  func.func @transform_6(%arg0: i32) -> (i32, i32) {
    %c0_i32 = arith.constant 0 : i32
    %c0_i32_0 = arith.constant 0 : i32
    return %arg0, %c0_i32 : i32, i32
  }
}

</mosaic_0001>

<bundles_post_ra>
// kernel: tpu_custom_call.1
= control target key start
LH: loop header
LB: loop body
LE: loop exit
PB: predicated region body
PF: predicated region fallthrough
CT: control target
= control target key end

     0   :  { %12 = vsyncpa [#allocation3], 0  ;;  %s5051_s0 = inlined_call_operand.hbm [shape: f32[2,784], index: 0, kind: input, shape index: {}]   ;;  %s5052_s1 = inlined_call_operand.hbm [shape: bf16[784,256], index: 1, kind: input, shape index: {}]   ;;  %s5053_s2 = inlined_call_operand.vmem [shape: f32[1,256], index: 2, kind: input, shape index: {}]   ;;  %s5054_s3 = inlined_call_operand.hbm [shape: bf16[256,128], index: 3, kind: input, shape index: {}]   ;;  %s5055_s4 = inlined_call_operand.vmem [shape: f32[1,128], index: 4, kind: input, shape index: {}]   ;;  %s5056_s5 = inlined_call_operand.hbm [shape: f32[2,256], index: 5, kind: output, shape index: {0}]   ;;  %s5057_s6 = inlined_call_operand.hbm [shape: f32[2,128], index: 6, kind: output, shape index: {1}]  }
   0x1   :  { %13 = vsyncpa [#allocation6], 0 }
   0x2   :  { %14 = vsyncpa [#allocation4], 0 }
   0x3   :  { %15 = vsyncpa [#allocation10], 0 }
   0x4   :  { %20 = vsyncadd [#allocation3], 14112  ;;  %s4348_s21 = smov [#allocation5]   ;;  %s4230_s25 = scalar_lea.hbm %s5052_s1, 12544 }
   0x5   :  { %s33_s22 = sshll.u32 %s4348_s21, 4  ;;  %p4231_p0 = scmp.ne.s32.totalorder %s5052_s1, %s4230_s25  ;;  %s34_s22 = int_to_ptr.vmem [resolvable:$true] %s33_s22 }
   0x6   :  { %p4234_p1 = scmp.lt.u32.totalorder %s4230_s25, %s5052_s1 }
   0x8   :  { %p4236_p2 = pnand %p4234_p1, %p4231_p0 }
   0xa   :  { %4239 = shalt.err (!%p4236_p2)
}
   0xb   :  { %s4240_s30 = scalar_lea.vmem %s34_s22, 12544  ;;  %p4245_p4 = scmp.lt.s32.totalorder %s34_s22, %s34_s22 }
   0xc   :  { %p4241_p3 = scmp.ne.s32.totalorder %s34_s22, %s4240_s30  ;;  %p4246_p5 = scmp.lt.s32.totalorder %s4240_s30, %s4240_s30 }
   0xe   :  { %p4247_p6 = por %p4246_p5, %p4245_p4 }
  0x10   :  { %p4248_p7 = pnand %p4247_p6, %p4241_p3 }
  0x12   :  { %4251 = shalt.err (!%p4248_p7)
}
  0x13   :  { %s4349_s7 = smov 128   ;;  %s4350_s8 = smov 8  }
  0x14   :  { %39 = dma.hbm_to_vmem [thread:$0]  %s5052_s1, 12544, %s34_s22, [#allocation6], %s4349_s7, %s4349_s7, %s4350_s8  }
  0x15   :  { %s4351_s11 = smov [#allocation2]   ;;  %s4252_s15 = scalar_lea.hbm %s5051_s0, 224 }
  0x16   :  { %s21_s12 = sshll.u32 %s4351_s11, 4  ;;  %p4253_p8 = scmp.ne.s32.totalorder %s5051_s0, %s4252_s15  ;;  %s22_s12 = int_to_ptr.vmem [resolvable:$true] %s21_s12 }
  0x17   :  { %p4256_p9 = scmp.lt.u32.totalorder %s4252_s15, %s5051_s0 }
  0x19   :  { %p4258_p10 = pnand %p4256_p9, %p4253_p8 }
  0x1b   :  { %4261 = shalt.err (!%p4258_p10)
}
  0x1c   :  { %s4262_s20 = scalar_lea.vmem %s22_s12, 224  ;;  %s4266_s1 = scalar_lea.vmem %s22_s12, 14336 }
  0x1d   :  { %p4263_p11 = scmp.ne.s32.totalorder %s22_s12, %s4262_s20  ;;  %p4267_p12 = scmp.lt.s32.totalorder %s22_s12, %s22_s12 }
  0x1e   :  { %p4268_p13 = scmp.lt.s32.totalorder %s4266_s1, %s4262_s20 }
  0x20   :  { %p4269_p0 = por %p4268_p13, %p4267_p12 }
  0x22   :  { %p4270_p1 = pnand %p4269_p0, %p4263_p11 }
  0x24   :  { %4273 = shalt.err (!%p4270_p1)
}
  0x25   :  { %s4352_s21 = smov 224   ;;  %s4353_s22 = smov 14  }
  0x26   :  { %27 = dma.hbm_to_vmem [thread:$0]  %s5051_s0, 224, %s22_s12, [#allocation3], %s4352_s21, %s4352_s21, %s4353_s22  }
  0x27   :  { %s4354_s25 = smov [#allocation7]   ;;  %s4274_s29 = scalar_lea.hbm %s5054_s3, 2048 }
  0x28   :  { %s47_s26 = sshll.u32 %s4354_s25, 4  ;;  %p4275_p2 = scmp.ne.s32.totalorder %s5054_s3, %s4274_s29  ;;  %s48_s26 = int_to_ptr.vmem [resolvable:$true] %s47_s26 }
  0x29   :  { %p4278_p3 = scmp.lt.u32.totalorder %s4274_s29, %s5054_s3 }
  0x2b   :  { %p4280_p4 = pnand %p4278_p3, %p4275_p2 }
  0x2d   :  { %4283 = shalt.err (!%p4280_p4)
}
  0x2e   :  { %s4284_s10 = scalar_lea.vmem %s48_s26, 2048  ;;  %p4289_p6 = scmp.lt.s32.totalorder %s48_s26, %s48_s26 }
  0x2f   :  { %p4285_p5 = scmp.ne.s32.totalorder %s48_s26, %s4284_s10  ;;  %p4290_p7 = scmp.lt.s32.totalorder %s4284_s10, %s4284_s10 }
  0x31   :  { %p4291_p8 = por %p4290_p7, %p4289_p6 }
  0x33   :  { %p4292_p9 = pnand %p4291_p8, %p4285_p5 }
  0x35   :  { %4295 = shalt.err (!%p4292_p9)
}
  0x36   :  { %s4355_s0 = smov 64   ;;  %s4356_s11 = smov 4  }
  0x37   :  { %53 = dma.hbm_to_vmem [thread:$0]  %s5054_s3, 2048, %s48_s26, [#allocation6], %s4355_s0, %s4355_s0, %s4356_s11  }
  0x38   :  { %4340 = dma.done.wait [#allocation3], 14336  }
  0x39   :  { %4341 = vsyncadd [#allocation3], 4294952960 }
  0x3a   :  { %4342 = dma.done.wait [#allocation6], 14592  }
  0x3b   :  { %4343 = vsyncadd [#allocation6], 4294952704  ;;  %v3875_v0 = vld [vmem:[#allocation5 + $0x4] ss:$8 sps:$4 sm:$0xff]   ;;  %v3879_v2 = vld [vmem:[#allocation5] ss:$8 sps:$4 sm:$0xff]   ;;  %v329_v41 = vlaneseq }
  0x3c   :  { %v3877_v1 = vld [vmem:[#allocation5 + $0x104] ss:$8 sps:$4 sm:$0xff]   ;;  %2251 = vmatprep.subr.bf16.mxu1 %v3875_v0  ;;  %v3880_v3 = vld [vmem:[#allocation5 + $0x100] ss:$8 sps:$4 sm:$0xff]   ;;  %v3881_v4 = vld [vmem:[#allocation5 + $0x14] ss:$8 sps:$4 sm:$0xff]  }
  0x3d   :  { %2364 = vmatprep.subr.bf16.mxu0 %v3877_v1  ;;  %2252 = vmatpush1.bf16.msra.mxu1 %v3879_v2  ;;  %v3883_v5 = vld [vmem:[#allocation5 + $0x114] ss:$8 sps:$4 sm:$0xff]   ;;  %v3885_v6 = vld [vmem:[#allocation5 + $0x10] ss:$8 sps:$4 sm:$0xff]   ;;  %v3887_v8 = vld [vmem:[#allocation5 + $0x24] ss:$8 sps:$4 sm:$0xff]  }
  0x3e   :  { %2365 = vmatpush1.bf16.msra.mxu0 %v3880_v3  ;;  %2253 = vmatprep.subr.bf16.mxu1 %v3881_v4  ;;  %v3886_v7 = vld [vmem:[#allocation5 + $0x110] ss:$8 sps:$4 sm:$0xff]   ;;  %v3889_v9 = vld [vmem:[#allocation5 + $0x124] ss:$8 sps:$4 sm:$0xff]   ;;  %v3891_v10 = vld [vmem:[#allocation5 + $0x20] ss:$8 sps:$4 sm:$0xff]  }
  0x3f   :  { %2366 = vmatprep.subr.bf16.mxu0 %v3883_v5  ;;  %v3892_v11 = vld [vmem:[#allocation5 + $0x120] ss:$8 sps:$4 sm:$0xff]   ;;  %v3893_v12 = vld [vmem:[#allocation5 + $0x34] ss:$8 sps:$4 sm:$0xff]   ;;  %v3897_v14 = vld [vmem:[#allocation5 + $0x30] ss:$8 sps:$4 sm:$0xff]  }
  0x40   :  { %v3895_v13 = vld [vmem:[#allocation5 + $0x134] ss:$8 sps:$4 sm:$0xff]   ;;  %v3898_v15 = vld [vmem:[#allocation5 + $0x130] ss:$8 sps:$4 sm:$0xff]   ;;  %v3899_v16 = vld [vmem:[#allocation5 + $0x44] ss:$8 sps:$4 sm:$0xff]  }
  0x41   :  { %2254 = vmatpush1.bf16.msra.mxu1 %v3885_v6  ;;  %v3901_v17 = vld [vmem:[#allocation5 + $0x144] ss:$8 sps:$4 sm:$0xff]   ;;  %v3903_v18 = vld [vmem:[#allocation5 + $0x40] ss:$8 sps:$4 sm:$0xff]   ;;  %v3905_v20 = vld [vmem:[#allocation5 + $0x54] ss:$8 sps:$4 sm:$0xff]  }
  0x42   :  { %2367 = vmatpush1.bf16.msra.mxu0 %v3886_v7  ;;  %2255 = vmatprep.subr.bf16.mxu1 %v3887_v8  ;;  %v3904_v19 = vld [vmem:[#allocation5 + $0x140] ss:$8 sps:$4 sm:$0xff]   ;;  %v3907_v21 = vld [vmem:[#allocation5 + $0x154] ss:$8 sps:$4 sm:$0xff]   ;;  %v3909_v22 = vld [vmem:[#allocation5 + $0x50] ss:$8 sps:$4 sm:$0xff]  }
  0x43   :  { %2368 = vmatprep.subr.bf16.mxu0 %v3889_v9  ;;  %v3910_v23 = vld [vmem:[#allocation5 + $0x150] ss:$8 sps:$4 sm:$0xff]   ;;  %v3911_v24 = vld [vmem:[#allocation5 + $0x64] ss:$8 sps:$4 sm:$0xff]   ;;  %v3915_v26 = vld [vmem:[#allocation5 + $0x60] ss:$8 sps:$4 sm:$0xff]  }
  0x44   :  { %v3913_v25 = vld [vmem:[#allocation5 + $0x164] ss:$8 sps:$4 sm:$0xff]   ;;  %v3916_v27 = vld [vmem:[#allocation5 + $0x160] ss:$8 sps:$4 sm:$0xff]   ;;  %v3917_v28 = vld [vmem:[#allocation5 + $0x74] ss:$8 sps:$4 sm:$0xff]  }
  0x45   :  { %2256 = vmatpush1.bf16.msra.mxu1 %v3891_v10  ;;  %v3919_v29 = vld [vmem:[#allocation5 + $0x174] ss:$8 sps:$4 sm:$0xff]   ;;  %v3921_v30 = vld [vmem:[#allocation5 + $0x70] ss:$8 sps:$4 sm:$0xff]   ;;  %v3923_v32 = vld [vmem:[#allocation5 + $0x84] ss:$8 sps:$4 sm:$0xff]  }
  0x46   :  { %2369 = vmatpush1.bf16.msra.mxu0 %v3892_v11  ;;  %2257 = vmatprep.subr.bf16.mxu1 %v3893_v12  ;;  %v3922_v31 = vld [vmem:[#allocation5 + $0x170] ss:$8 sps:$4 sm:$0xff]   ;;  %v3925_v33 = vld [vmem:[#allocation5 + $0x184] ss:$8 sps:$4 sm:$0xff]   ;;  %v3927_v34 = vld [vmem:[#allocation5 + $0x80] ss:$8 sps:$4 sm:$0xff]  }
  0x47   :  { %2370 = vmatprep.subr.bf16.mxu0 %v3895_v13  ;;  %v3928_v35 = vld [vmem:[#allocation5 + $0x180] ss:$8 sps:$4 sm:$0xff]   ;;  %v3929_v36 = vld [vmem:[#allocation5 + $0x94] ss:$8 sps:$4 sm:$0xff]   ;;  %v3933_v38 = vld [vmem:[#allocation5 + $0x90] ss:$8 sps:$4 sm:$0xff]  }
  0x48   :  { %v3931_v37 = vld [vmem:[#allocation5 + $0x194] ss:$8 sps:$4 sm:$0xff]   ;;  %v4357_v39 = vmov 1983009808   ;;  %v3934_v42 = vld [vmem:[#allocation5 + $0x190] ss:$8 sps:$4 sm:$0xff]  }
  0x49   :  { %2258 = vmatpush1.bf16.msra.mxu1 %v3897_v14  ;;  %v327_v40 = vunpack.c.l.s4 %v4357_v39  ;;  %v3935_v43 = vld [vmem:[#allocation5 + $0xa4] ss:$8 sps:$4 sm:$0xff]   ;;  %v3939_v45 = vld [vmem:[#allocation5 + $0xa0] ss:$8 sps:$4 sm:$0xff]   ;;  %v4437_v48 = vshrl.u32 %v329_v41, 7  ;;  %vm2226_vm0 = vcmask 130048  }
  0x4a   :  { %2371 = vmatpush1.bf16.msra.mxu0 %v3898_v15  ;;  %2259 = vmatprep.subr.bf16.mxu1 %v3899_v16  ;;  %v3937_v44 = vld [vmem:[#allocation5 + $0x1a4] ss:$8 sps:$4 sm:$0xff]   ;;  %v3940_v46 = vld [vmem:[#allocation5 + $0x1a0] ss:$8 sps:$4 sm:$0xff]   ;;  %v3941_v49 = vld [vmem:[#allocation5 + $0xb4] ss:$8 sps:$4 sm:$0xff]  }
  0x4b   :  { %2372 = vmatprep.subr.bf16.mxu0 %v3901_v17  ;;  %v328_v47 = vunpack.c.0.s8 %v327_v40  ;;  %v3943_v50 = vld [vmem:[#allocation5 + $0x1b4] ss:$8 sps:$4 sm:$0xff]   ;;  %v3945_v51 = vld [vmem:[#allocation5 + $0xb0] ss:$8 sps:$4 sm:$0xff]   ;;  %v3947_v53 = vld [vmem:[#allocation5 + $0xc4] ss:$8 sps:$4 sm:$0xff]  }
  0x4c   :  { %v3946_v52 = vld [vmem:[#allocation5 + $0x1b0] ss:$8 sps:$4 sm:$0xff]   ;;  %v3949_v54 = vld [vmem:[#allocation5 + $0x1c4] ss:$8 sps:$4 sm:$0xff]   ;;  %v3951_v58 = vld [vmem:[#allocation5 + $0xc0] ss:$8 sps:$4 sm:$0xff]  }
  0x4d   :  { %2260 = vmatpush1.bf16.msra.mxu1 %v3903_v18  ;;  %v4440_v55 = vsub.s32 %v328_v47, %v4437_v48  ;;  %v3971_v56 = vld [vmem:[#allocation2] ss:$14 sps:$4 sm:$0xff]   ;;  %v3973_v57 = vld [vmem:[#allocation2 + $0x1c] ss:$14 sps:$4 sm:$0xff]   ;;  %v3975_v60 = vld [vmem:[#allocation2 + $0x38] ss:$14 sps:$4 sm:$0xff]  }
  0x4e   :  { %2373 = vmatpush1.bf16.msra.mxu0 %v3904_v19  ;;  %2261 = vmatprep.subr.bf16.mxu1 %v3905_v20  ;;  %v3952_v59 = vld [vmem:[#allocation5 + $0x1c0] ss:$8 sps:$4 sm:$0xff]   ;;  %v3979_v62 = vld [vmem:[#allocation2 + $0x4] ss:$14 sps:$4 sm:$0xff]  }
  0x4f   :  { %2374 = vmatprep.subr.bf16.mxu0 %v3907_v21  ;;  %v3977_v61 = vld [vmem:[#allocation2 + $0x54] ss:$14 sps:$4 sm:$0xff]   ;;  %v4443_v63 = vrot.slane %v3971_v56, %v4440_v55  ;;  %v4446_v0 = vrot.slane %v3973_v57, %v4440_v55  ;;  %v3981_v2 = vld [vmem:[#allocation2 + $0x3c] ss:$14 sps:$4 sm:$0xff]   ;;  %v3982_v3 = vld [vmem:[#allocation2 + $0x58] ss:$14 sps:$4 sm:$0xff]   ;;  %v4449_v5 = vrot.slane %v3975_v60, %v4440_v55  ;;  %v4455_v7 = vrot.slane %v3979_v62, %v4440_v55 }
  0x50   :  { %v3980_v1 = vld [vmem:[#allocation2 + $0x20] ss:$14 sps:$4 sm:$0xff]   ;;  %v3953_v4 = vld [vmem:[#allocation5 + $0xd4] ss:$8 sps:$4 sm:$0xff]   ;;  %v4452_v6 = vrot.slane %v3977_v61, %v4440_v55  ;;  %v4463_v11 = vrot.slane %v3981_v2, %v4440_v55  ;;  %v424_v15 = vrot.slane %v3982_v3, %v4440_v55  ;;  %v4011_v57 = vld [vmem:[#allocation2 + $0x118] ss:$14 sps:$4 sm:$0xff]  }
  0x51   :  { %2262 = vmatpush1.bf16.msra.mxu1 %v3909_v22  ;;  %v3955_v8 = vld [vmem:[#allocation5 + $0x1d4] ss:$8 sps:$4 sm:$0xff]   ;;  %v355_v9 = vcombine.high %v4443_v63, %v4446_v0  ;;  %v4460_v10 = vrot.slane %v3980_v1, %v4440_v55  ;;  %v3957_v12 = vld [vmem:[#allocation5 + $0xd0] ss:$8 sps:$4 sm:$0xff]   ;;  %v3959_v16 = vld [vmem:[#allocation5 + $0xe4] ss:$8 sps:$4 sm:$0xff]  }
  0x52   :  { %2375 = vmatpush1.bf16.msra.mxu0 %v3910_v23  ;;  %2263 = vmatprep.subr.bf16.mxu1 %v3911_v24  ;;  %v3958_v13 = vld [vmem:[#allocation5 + $0x1d0] ss:$8 sps:$4 sm:$0xff]   ;;  %v426_v14 = vcombine.high %v4449_v5, %v4452_v6  ;;  %v3961_v17 = vld [vmem:[#allocation5 + $0x1e4] ss:$8 sps:$4 sm:$0xff]   ;;  %v428_v20 = vcombine.high %v4463_v11, %v424_v15  ;;  %v3963_v23 = vld [vmem:[#allocation5 + $0xe0] ss:$8 sps:$4 sm:$0xff]   ;;  %v427_v47 = vcombine.low %v4463_v11, %v424_v15 }
  0x53   :  { %2376 = vmatprep.subr.bf16.mxu0 %v3913_v25  ;;  %v357_v18 = vcombine.high %v4455_v7, %v4460_v10  ;;  %v3989_v21 = vld [vmem:[#allocation2 + $0x70] ss:$14 sps:$4 sm:$0xff]   ;;  %v3991_v22 = vld [vmem:[#allocation2 + $0x8c] ss:$14 sps:$4 sm:$0xff]  }
  0x54   :  { %v1571_v19 = vpack.c.bf16 %v426_v14, %v355_v9  ;;  %v3964_v24 = vld [vmem:[#allocation5 + $0x1e0] ss:$8 sps:$4 sm:$0xff]   ;;  %v3969_v41 = vld [vmem:[#allocation5 + $0xf0] ss:$8 sps:$4 sm:$0xff]  }
  0x55   :  { %2264 = vmatpush1.bf16.msra.mxu1 %v3915_v26  ;;  %v1573_v25 = vpack.c.bf16 %v428_v20, %v357_v18  ;;  %v3993_v26 = vld [vmem:[#allocation2 + $0xa8] ss:$14 sps:$4 sm:$0xff]   ;;  %v4003_v18 = vld [vmem:[#allocation5 + $0x224] ss:$8 sps:$4 sm:$0xff]   ;;  %v4025_v20 = vld [vmem:[#allocation2 + $0x150] ss:$14 sps:$4 sm:$0xff]  }
  0x56   :  { %2377 = vmatpush1.bf16.msra.mxu0 %v3916_v27  ;;  %2265 = vmatprep.subr.bf16.mxu1 %v3917_v28  ;;  %v3995_v27 = vld [vmem:[#allocation2 + $0xc4] ss:$14 sps:$4 sm:$0xff]   ;;  %v4009_v56 = vld [vmem:[#allocation2 + $0xfc] ss:$14 sps:$4 sm:$0xff]  }
  0x57   :  { %2378 = vmatprep.subr.bf16.mxu0 %v3919_v29  ;;  %2283 = vmatprep.mubr.bf16.mxu1 %v1571_v19  ;;  %v3997_v28 = vld [vmem:[#allocation2 + $0x74] ss:$14 sps:$4 sm:$0xff]   ;;  %v4472_v29 = vrot.slane %v3989_v21, %v4440_v55  ;;  %v4018_v1 = vld [vmem:[#allocation2 + $0x138] ss:$14 sps:$4 sm:$0xff]  }
  0x58   :  { %2396 = vmatprep.mubr.bf16.mxu0 %v1573_v25  ;;  %v3983_v2 = vld [vmem:[#allocation5 + $0x200] ss:$8 sps:$4 sm:$0xff]   ;;  %v4534_v14 = vrot.slane %v4018_v1, %v4440_v55  ;;  %v4027_v21 = vld [vmem:[#allocation2 + $0x16c] ss:$14 sps:$4 sm:$0xff]  }
  0x59   :  { %2266 = vmatpush1.bf16.msra.mxu1 %v3921_v30  ;;  %v4475_v30 = vrot.slane %v3991_v22, %v4440_v55  ;;  %v4029_v25 = vld [vmem:[#allocation2 + $0x188] ss:$14 sps:$4 sm:$0xff]   ;;  %v4052_v1 = vld [vmem:[#allocation2 + $0x1e0] ss:$14 sps:$4 sm:$0xff]  }
  0x5a   :  { %2379 = vmatpush1.bf16.msra.mxu0 %v3922_v31  ;;  %2267 = vmatprep.subr.bf16.mxu1 %v3923_v32  ;;  %v3998_v31 = vld [vmem:[#allocation2 + $0x90] ss:$14 sps:$4 sm:$0xff]   ;;  %v3999_v32 = vld [vmem:[#allocation2 + $0xac] ss:$14 sps:$4 sm:$0xff]  }
  0x5b   :  { %2380 = vmatprep.subr.bf16.mxu0 %v3925_v33  ;;  %v4000_v33 = vld [vmem:[#allocation2 + $0xc8] ss:$14 sps:$4 sm:$0xff]   ;;  %v4487_v39 = vrot.slane %v3998_v31, %v4440_v55  ;;  %v4490_v40 = vrot.slane %v3999_v32, %v4440_v55  ;;  %v496_v62 = vcombine.low %v4472_v29, %v4475_v30  ;;  %v4554_v31 = vrot.slane %v4027_v21, %v4440_v55  ;;  %v4034_v32 = vld [vmem:[#allocation2 + $0x170] ss:$14 sps:$4 sm:$0xff]  }
  0x5d   :  { %2268 = vmatpush1.bf16.msra.mxu1 %v3927_v34  ;;  %v3965_v34 = vld [vmem:[#allocation5 + $0xf4] ss:$8 sps:$4 sm:$0xff]  }
  0x5e   :  { %2381 = vmatpush1.bf16.msra.mxu0 %v3928_v35  ;;  %2269 = vmatprep.subr.bf16.mxu1 %v3929_v36  ;;  %v4478_v35 = vrot.slane %v3993_v26, %v4440_v55  ;;  %v4481_v36 = vrot.slane %v3995_v27, %v4440_v55  ;;  %v4031_v26 = vld [vmem:[#allocation2 + $0x1a4] ss:$14 sps:$4 sm:$0xff]  }
  0x5f   :  { %2382 = vmatprep.subr.bf16.mxu0 %v3931_v37  ;;  %v4484_v37 = vrot.slane %v3997_v28, %v4440_v55  ;;  %v4033_v27 = vld [vmem:[#allocation2 + $0x154] ss:$14 sps:$4 sm:$0xff]  }
  0x60   :  { %v567_v15 = vcombine.low %v4478_v35, %v4481_v36 }
  0x61   :  { %2270 = vmatpush1.bf16.msra.mxu1 %v3933_v38  ;;  %v3967_v38 = vld [vmem:[#allocation5 + $0x1f4] ss:$8 sps:$4 sm:$0xff]  }
  0x62   :  { %2383 = vmatpush1.bf16.msra.mxu0 %v3934_v42  ;;  %2271 = vmatprep.subr.bf16.mxu1 %v3935_v43  ;;  %v3970_v42 = vld [vmem:[#allocation5 + $0x1f0] ss:$8 sps:$4 sm:$0xff]   ;;  %v354_v43 = vcombine.low %v4443_v63, %v4446_v0  ;;  %v4017_v0 = vld [vmem:[#allocation2 + $0x11c] ss:$14 sps:$4 sm:$0xff]   ;;  %v1577_v28 = vpack.c.bf16 %v567_v15, %v496_v62 }
  0x63   :  { %2384 = vmatprep.subr.bf16.mxu0 %v3937_v44  ;;  %v4495_v44 = vrot.slane %v4000_v33, %v4440_v55  ;;  %v4016_v63 = vld [vmem:[#allocation2 + $0x100] ss:$14 sps:$4 sm:$0xff]  }
  0x64   :  { %v4035_v33 = vld [vmem:[#allocation2 + $0x18c] ss:$14 sps:$4 sm:$0xff]  }
  0x65   :  { %2272 = vmatpush1.bf16.msra.mxu1 %v3939_v45  ;;  %v425_v45 = vcombine.low %v4449_v5, %v4452_v6  ;;  %v3988_v6 = vld [vmem:[#allocation5 + $0x214] ss:$8 sps:$4 sm:$0xff]  }
  0x66   :  { %2385 = vmatpush1.bf16.msra.mxu0 %v3940_v46  ;;  %2273 = vmatprep.subr.bf16.mxu1 %v3941_v49  ;;  %v356_v46 = vcombine.low %v4455_v7, %v4460_v10  ;;  %v3985_v49 = vld [vmem:[#allocation5 + $0x204] ss:$8 sps:$4 sm:$0xff]   ;;  %v4516_v7 = vrot.slane %v4009_v56, %v4440_v55  ;;  %v3986_v10 = vld [vmem:[#allocation5 + $0x210] ss:$8 sps:$4 sm:$0xff]  }
  0x67   :  { %2386 = vmatprep.subr.bf16.mxu0 %v3943_v50  ;;  %v497_v50 = vcombine.high %v4472_v29, %v4475_v30  ;;  %v1570_v60 = vpack.c.bf16 %v425_v45, %v354_v43  ;;  %v4551_v30 = vrot.slane %v4025_v20, %v4440_v55  ;;  %v4004_v43 = vld [vmem:[#allocation5 + $0x230] ss:$8 sps:$4 sm:$0xff]   ;;  %v4039_v20 = vld [vmem:[#allocation5 + $0x264] ss:$8 sps:$4 sm:$0xff]  }
  0x68   :  { %v1572_v61 = vpack.c.bf16 %v427_v47, %v356_v46 }
  0x69   :  { %2274 = vmatpush1.bf16.msra.mxu1 %v3945_v51  ;;  %v568_v51 = vcombine.high %v4478_v35, %v4481_v36  ;;  %v4001_v35 = vld [vmem:[#allocation5 + $0x220] ss:$8 sps:$4 sm:$0xff]   ;;  %v4557_v36 = vrot.slane %v4029_v25, %v4440_v55 }
  0x6a   :  { %2387 = vmatpush1.bf16.msra.mxu0 %v3946_v52  ;;  %2275 = vmatprep.subr.bf16.mxu1 %v3947_v53  ;;  %v499_v52 = vcombine.high %v4484_v37, %v4487_v39  ;;  %v570_v53 = vcombine.high %v4490_v40, %v4495_v44 }
  0x6b   :  { %2388 = vmatprep.subr.bf16.mxu0 %v3949_v54  ;;  %v4007_v54 = vld [vmem:[#allocation2 + $0xe0] ss:$14 sps:$4 sm:$0xff]   ;;  %v1578_v3 = vpack.c.bf16 %v568_v51, %v497_v50 }
  0x6c   :  { %v4513_v5 = vrot.slane %v4007_v54, %v4440_v55  ;;  %v4021_v51 = vld [vmem:[#allocation5 + $0x244] ss:$8 sps:$4 sm:$0xff]  }
  0x6d   :  { %2276 = vmatpush1.bf16.msra.mxu1 %v3951_v58  ;;  %v4013_v58 = vld [vmem:[#allocation2 + $0x134] ss:$14 sps:$4 sm:$0xff]  }
  0x6e   :  { %2389 = vmatpush1.bf16.msra.mxu0 %v3952_v59  ;;  %2277 = vmatprep.subr.bf16.mxu1 %v3953_v4  ;;  %v4015_v59 = vld [vmem:[#allocation2 + $0xe4] ss:$14 sps:$4 sm:$0xff]   ;;  %v1580_v4 = vpack.c.bf16 %v570_v53, %v499_v52  ;;  %v4522_v9 = vrot.slane %v4013_v58, %v4440_v55  ;;  %v639_v19 = vcombine.high %v4513_v5, %v4516_v7  ;;  %v4045_v58 = vld [vmem:[#allocation2 + $0x1dc] ss:$14 sps:$4 sm:$0xff]  }
  0x6f   :  { %2390 = vmatprep.subr.bf16.mxu0 %v3955_v8  ;;  %v4519_v8 = vrot.slane %v4011_v57, %v4440_v55  ;;  %v4525_v11 = vrot.slane %v4015_v59, %v4440_v55  ;;  %v781_v52 = vcombine.high %v4551_v30, %v4554_v31  ;;  %v4043_v57 = vld [vmem:[#allocation2 + $0x1c0] ss:$14 sps:$4 sm:$0xff]   ;;  %v4047_v59 = vld [vmem:[#allocation2 + $0x1f8] ss:$14 sps:$4 sm:$0xff]  }
  0x71   :  { %2278 = vmatpush1.bf16.msra.mxu1 %v3957_v12  ;;  %v4528_v12 = vrot.slane %v4016_v63, %v4440_v55  ;;  %v710_v22 = vcombine.high %v4519_v8, %v4522_v9  ;;  %v709_v46 = vcombine.low %v4519_v8, %v4522_v9  ;;  %v4024_v8 = vld [vmem:[#allocation5 + $0x254] ss:$8 sps:$4 sm:$0xff]   ;;  %v4596_v9 = vrot.slane %v4045_v58, %v4440_v55 }
  0x72   :  { %2391 = vmatpush1.bf16.msra.mxu0 %v3958_v13  ;;  %2279 = vmatprep.subr.bf16.mxu1 %v3959_v16  ;;  %v4531_v13 = vrot.slane %v4017_v0, %v4440_v55  ;;  %v498_v16 = vcombine.low %v4484_v37, %v4487_v39  ;;  %v4560_v37 = vrot.slane %v4031_v26, %v4440_v55  ;;  %v4006_v39 = vld [vmem:[#allocation5 + $0x234] ss:$8 sps:$4 sm:$0xff]  }
  0x73   :  { %2392 = vmatprep.subr.bf16.mxu0 %v3961_v17  ;;  %v569_v17 = vcombine.low %v4490_v40, %v4495_v44  ;;  %v638_v40 = vcombine.low %v4513_v5, %v4516_v7  ;;  %v1585_v44 = vpack.c.bf16 %v710_v22, %v639_v19  ;;  %v780_v0 = vcombine.low %v4551_v30, %v4554_v31  ;;  %v4061_v22 = vld [vmem:[#allocation2 + $0x230] ss:$14 sps:$4 sm:$0xff]  }
  0x74   :  { %v711_v50 = vcombine.low %v4531_v13, %v4534_v14  ;;  %v852_v53 = vcombine.high %v4557_v36, %v4560_v37  ;;  %v4593_v7 = vrot.slane %v4043_v57, %v4440_v55 }
  0x75   :  { %2280 = vmatpush1.bf16.msra.mxu1 %v3963_v23  ;;  %v641_v23 = vcombine.high %v4525_v11, %v4528_v12  ;;  %v1579_v29 = vpack.c.bf16 %v569_v17, %v498_v16  ;;  %v1584_v62 = vpack.c.bf16 %v709_v46, %v638_v40  ;;  %v851_v17 = vcombine.low %v4557_v36, %v4560_v37  ;;  %v4072_v36 = vld [vmem:[#allocation2 + $0x288] ss:$14 sps:$4 sm:$0xff]  }
  0x76   :  { %2393 = vmatpush1.bf16.msra.mxu0 %v3964_v24  ;;  %2281 = vmatprep.subr.bf16.mxu1 %v3965_v34  ;;  %v712_v24 = vcombine.high %v4531_v13, %v4534_v14  ;;  %v4036_v34 = vld [vmem:[#allocation2 + $0x1a8] ss:$14 sps:$4 sm:$0xff]   ;;  %v1592_v5 = vpack.c.bf16 %v852_v53, %v781_v52  ;;  %v4608_v14 = vrot.slane %v4052_v1, %v4440_v55  ;;  %v4057_v53 = vld [vmem:[#allocation5 + $0x284] ss:$8 sps:$4 sm:$0xff]  }
  0x77   :  { %2394 = vmatprep.subr.bf16.mxu0 %v3967_v38  ;;  %v4563_v38 = vrot.slane %v4033_v27, %v4440_v55  ;;  %v4576_v47 = vrot.slane %v4036_v34, %v4440_v55  ;;  %v923_v21 = vcombine.high %v4593_v7, %v4596_v9  ;;  %v4065_v27 = vld [vmem:[#allocation2 + $0x268] ss:$14 sps:$4 sm:$0xff]   ;;  %v1591_v30 = vpack.c.bf16 %v851_v17, %v780_v0  ;;  %v4070_v34 = vld [vmem:[#allocation2 + $0x250] ss:$14 sps:$4 sm:$0xff]  }
  0x78   :  { %v1587_v45 = vpack.c.bf16 %v712_v24, %v641_v23  ;;  %v4063_v23 = vld [vmem:[#allocation2 + $0x24c] ss:$14 sps:$4 sm:$0xff]   ;;  %v4037_v37 = vld [vmem:[#allocation5 + $0x260] ss:$8 sps:$4 sm:$0xff]  }
  0x79   :  { %2282 = vmatpush1.bf16.msra.mxu1 %v3969_v41  ;;  %v4568_v41 = vrot.slane %v4034_v32, %v4440_v55  ;;  %v4631_v32 = vrot.slane %v4061_v22, %v4440_v55  ;;  %v4075_v22 = vld [vmem:[#allocation5 + $0x2a4] ss:$8 sps:$4 sm:$0xff]  }
  0x7a   :  { %2395 = vmatpush1.bf16.msra.mxu0 %v3970_v42  ;;  %3700 = vmatprep.subr.bf16.mxu1 %v3985_v49  ;;  %v4571_v42 = vrot.slane %v4035_v33, %v4440_v55  ;;  %v4634_v33 = vrot.slane %v4063_v23, %v4440_v55 }
  0x7b   :  { %2477 = vmatprep.subr.bf16.mxu0 %v3985_v49  ;;  %v640_v49 = vcombine.low %v4525_v11, %v4528_v12  ;;  %v783_v54 = vcombine.high %v4563_v38, %v4568_v41  ;;  %v4022_v12 = vld [vmem:[#allocation5 + $0x250] ss:$8 sps:$4 sm:$0xff]  }
  0x7c   :  { %2284 = vmatmul.mubr.bf16.vlgmr.msra.gmra.mrb[0].mxu1 %v1570_v60  ;;  %v854_v56 = vcombine.high %v4571_v42, %v4576_v47  ;;  %v4049_v60 = vld [vmem:[#allocation2 + $0x214] ss:$14 sps:$4 sm:$0xff]   ;;  %v853_v19 = vcombine.low %v4571_v42, %v4576_v47  ;;  %v922_v42 = vcombine.low %v4593_v7, %v4596_v9 }
  0x7d   :  { %2397 = vmatmul.mubr.bf16.vlgmr.msra.gmra.mrb[0].mxu0 %v1572_v61  ;;  %3716 = vmatpush1.bf16.msra.mxu1 %v3983_v2  ;;  %v4051_v61 = vld [vmem:[#allocation2 + $0x1c4] ss:$14 sps:$4 sm:$0xff]   ;;  %v1586_v63 = vpack.c.bf16 %v711_v50, %v640_v49  ;;  %v4602_v11 = vrot.slane %v4049_v60, %v4440_v55  ;;  %v4656_v50 = vrot.slane %v4072_v36, %v4440_v55  ;;  %v4081_v60 = vld [vmem:[#allocation2 + $0x2bc] ss:$14 sps:$4 sm:$0xff]  }
  0x7e   :  { %2478 = vmatpush1.bf16.msra.mxu0 %v3983_v2  ;;  %3701 = vmatprep.subr.bf16.mxu1 %v3988_v6  ;;  %v4053_v2 = vld [vmem:[#allocation2 + $0x1fc] ss:$14 sps:$4 sm:$0xff]   ;;  %v4605_v13 = vrot.slane %v4051_v61, %v4440_v55  ;;  %v4083_v61 = vld [vmem:[#allocation2 + $0x2d8] ss:$14 sps:$4 sm:$0xff]  }
  0x7f   :  { %2479 = vmatprep.subr.bf16.mxu0 %v3988_v6  ;;  %2293 = vmatprep.mubr.bf16.mxu1 %v1578_v3  ;;  %v4054_v3 = vld [vmem:[#allocation2 + $0x218] ss:$14 sps:$4 sm:$0xff]   ;;  %v1594_v6 = vpack.c.bf16 %v854_v56, %v783_v54  ;;  %v4611_v15 = vrot.slane %v4053_v2, %v4440_v55  ;;  %v1065_v54 = vcombine.high %v4631_v32, %v4634_v33 }
  0x80   :  { %2406 = vmatprep.mubr.bf16.mxu0 %v1580_v4  ;;  %v4019_v4 = vld [vmem:[#allocation5 + $0x240] ss:$8 sps:$4 sm:$0xff]   ;;  %v4614_v16 = vrot.slane %v4054_v3, %v4440_v55  ;;  %v925_v25 = vcombine.high %v4605_v13, %v4608_v14  ;;  %v1064_v2 = vcombine.low %v4631_v32, %v4634_v33  ;;  %v4107_v36 = vld [vmem:[#allocation2 + $0x34c] ss:$14 sps:$4 sm:$0xff]  }
  0x81   :  { %3717 = vmatpush1.bf16.msra.mxu1 %v3986_v10  ;;  %v4088_v3 = vld [vmem:[#allocation2 + $0x2c0] ss:$14 sps:$4 sm:$0xff]  }
  0x82   :  { %2480 = vmatpush1.bf16.msra.mxu0 %v3986_v10  ;;  %3702 = vmatprep.subr.bf16.mxu1 %v4003_v18  ;;  %v4599_v10 = vrot.slane %v4047_v59, %v4440_v55  ;;  %v996_v26 = vcombine.high %v4611_v15, %v4614_v16  ;;  %v995_v52 = vcombine.low %v4611_v15, %v4614_v16  ;;  %v4079_v59 = vld [vmem:[#allocation2 + $0x2a0] ss:$14 sps:$4 sm:$0xff]  }
  0x83   :  { %2481 = vmatprep.subr.bf16.mxu0 %v4003_v18  ;;  %v782_v18 = vcombine.low %v4563_v38, %v4568_v41  ;;  %v4637_v38 = vrot.slane %v4065_v27, %v4440_v55  ;;  %v4042_v41 = vld [vmem:[#allocation5 + $0x274] ss:$8 sps:$4 sm:$0xff]   ;;  %v4673_v9 = vrot.slane %v4079_v59, %v4440_v55  ;;  %v4688_v16 = vrot.slane %v4088_v3, %v4440_v55 }
  0x84   :  { %2294 = vmatmul.mubr.bf16.gmra.mrb[4].mxu1 %v1577_v28  ;;  %v994_v24 = vcombine.high %v4599_v10, %v4602_v11  ;;  %v4067_v28 = vld [vmem:[#allocation2 + $0x284] ss:$14 sps:$4 sm:$0xff]   ;;  %v1601_v47 = vpack.c.bf16 %v996_v26, %v925_v25  ;;  %v993_v49 = vcombine.low %v4599_v10, %v4602_v11  ;;  %v4676_v11 = vrot.slane %v4081_v60, %v4440_v55  ;;  %v4099_v25 = vld [vmem:[#allocation2 + $0x32c] ss:$14 sps:$4 sm:$0xff]  }
  0x85   :  { %2407 = vmatmul.mubr.bf16.gmra.mrb[4].mxu0 %v1579_v29  ;;  %3718 = vmatpush1.bf16.msra.mxu1 %v4001_v35  ;;  %v4069_v29 = vld [vmem:[#allocation2 + $0x234] ss:$14 sps:$4 sm:$0xff]   ;;  %v1593_v31 = vpack.c.bf16 %v853_v19, %v782_v18 }
  0x86   :  { %2482 = vmatpush1.bf16.msra.mxu0 %v4001_v35  ;;  %3703 = vmatprep.subr.bf16.mxu1 %v4006_v39  ;;  %v4071_v35 = vld [vmem:[#allocation2 + $0x26c] ss:$14 sps:$4 sm:$0xff]   ;;  %v4643_v40 = vrot.slane %v4069_v29, %v4440_v55  ;;  %v1599_v46 = vpack.c.bf16 %v994_v24, %v923_v21  ;;  %v1598_v0 = vpack.c.bf16 %v993_v49, %v922_v42  ;;  %v4097_v24 = vld [vmem:[#allocation2 + $0x310] ss:$14 sps:$4 sm:$0xff]   ;;  %v4101_v29 = vld [vmem:[#allocation2 + $0x348] ss:$14 sps:$4 sm:$0xff]  }
  0x87   :  { %2483 = vmatprep.subr.bf16.mxu0 %v4006_v39  ;;  %2303 = vmatprep.mubr.bf16.mxu1 %v1585_v44  ;;  %v4640_v39 = vrot.slane %v4067_v28, %v4440_v55  ;;  %v4651_v44 = vrot.slane %v4071_v35, %v4440_v55  ;;  %v4060_v10 = vld [vmem:[#allocation5 + $0x294] ss:$8 sps:$4 sm:$0xff]   ;;  %v1207_v23 = vcombine.high %v4673_v9, %v4676_v11 }
  0x88   :  { %2416 = vmatprep.mubr.bf16.mxu0 %v1587_v45  ;;  %v4040_v45 = vld [vmem:[#allocation5 + $0x270] ss:$8 sps:$4 sm:$0xff]   ;;  %v4078_v42 = vld [vmem:[#allocation5 + $0x2b4] ss:$8 sps:$4 sm:$0xff]  }
  0x89   :  { %3719 = vmatpush1.bf16.msra.mxu1 %v4004_v43  ;;  %v1136_v56 = vcombine.high %v4637_v38, %v4640_v39  ;;  %v1138_v58 = vcombine.high %v4651_v44, %v4656_v50  ;;  %v1135_v19 = vcombine.low %v4637_v38, %v4640_v39  ;;  %v1137_v21 = vcombine.low %v4651_v44, %v4656_v50  ;;  %v4106_v35 = vld [vmem:[#allocation2 + $0x330] ss:$14 sps:$4 sm:$0xff]  }
  0x8a   :  { %2484 = vmatpush1.bf16.msra.mxu0 %v4004_v43  ;;  %3704 = vmatprep.subr.bf16.mxu1 %v4021_v51  ;;  %v4648_v43 = vrot.slane %v4070_v34, %v4440_v55  ;;  %v4711_v34 = vrot.slane %v4097_v24, %v4440_v55  ;;  %v4073_v38 = vld [vmem:[#allocation5 + $0x2a0] ss:$8 sps:$4 sm:$0xff]   ;;  %v4714_v39 = vrot.slane %v4099_v25, %v4440_v55  ;;  %v4096_v3 = vld [vmem:[#allocation5 + $0x2d4] ss:$8 sps:$4 sm:$0xff]  }
  0x8b   :  { %2485 = vmatprep.subr.bf16.mxu0 %v4021_v51  ;;  %v924_v51 = vcombine.low %v4605_v13, %v4608_v14  ;;  %v1606_v7 = vpack.c.bf16 %v1136_v56, %v1065_v54  ;;  %v4058_v14 = vld [vmem:[#allocation5 + $0x290] ss:$8 sps:$4 sm:$0xff]   ;;  %v1605_v32 = vpack.c.bf16 %v1135_v19, %v1064_v2  ;;  %v4726_v44 = vrot.slane %v4106_v35, %v4440_v55  ;;  %v4136_v24 = vld [vmem:[#allocation2 + $0x21c] ss:$14 sps:$4 sm:$0xff]  }
  0x8c   :  { %2304 = vmatmul.mubr.bf16.gmra.mrb[8].mxu1 %v1584_v62  ;;  %v1067_v57 = vcombine.high %v4643_v40, %v4648_v43  ;;  %v4085_v62 = vld [vmem:[#allocation2 + $0x2f4] ss:$14 sps:$4 sm:$0xff]   ;;  %v1206_v50 = vcombine.low %v4673_v9, %v4676_v11  ;;  %v1349_v56 = vcombine.high %v4711_v34, %v4714_v39 }
  0x8d   :  { %2417 = vmatmul.mubr.bf16.gmra.mrb[8].mxu0 %v1586_v63  ;;  %3720 = vmatpush1.bf16.msra.mxu1 %v4019_v4  ;;  %v4087_v63 = vld [vmem:[#allocation2 + $0x2a4] ss:$14 sps:$4 sm:$0xff]   ;;  %v1600_v1 = vpack.c.bf16 %v995_v52, %v924_v51  ;;  %v4682_v13 = vrot.slane %v4085_v62, %v4440_v55  ;;  %v4121_v2 = vld [vmem:[#allocation2 + $0x40] ss:$14 sps:$4 sm:$0xff]  }
  0x8e   :  { %2486 = vmatpush1.bf16.msra.mxu0 %v4019_v4  ;;  %3705 = vmatprep.subr.bf16.mxu1 %v4024_v8  ;;  %v4089_v4 = vld [vmem:[#allocation2 + $0x2dc] ss:$14 sps:$4 sm:$0xff]   ;;  %v4685_v15 = vrot.slane %v4087_v63, %v4440_v55  ;;  %v4118_v62 = vld [vmem:[#allocation2 + $0x24] ss:$14 sps:$4 sm:$0xff]  }
  0x8f   :  { %2487 = vmatprep.subr.bf16.mxu0 %v4024_v8  ;;  %2313 = vmatprep.mubr.bf16.mxu1 %v1592_v5  ;;  %v4090_v5 = vld [vmem:[#allocation2 + $0x2f8] ss:$14 sps:$4 sm:$0xff]   ;;  %v1608_v8 = vpack.c.bf16 %v1138_v58, %v1067_v57  ;;  %v4691_v17 = vrot.slane %v4089_v4, %v4440_v55  ;;  %v4124_v4 = vld [vmem:[#allocation2 + $0x5c] ss:$14 sps:$4 sm:$0xff]   ;;  %v382_v9 = vrot.slane %v4118_v62, %v4440_v55 }
  0x90   :  { %2426 = vmatprep.mubr.bf16.mxu0 %v1594_v6  ;;  %v4055_v6 = vld [vmem:[#allocation5 + $0x280] ss:$8 sps:$4 sm:$0xff]   ;;  %v4694_v18 = vrot.slane %v4090_v5, %v4440_v55  ;;  %v1209_v27 = vcombine.high %v4685_v15, %v4688_v16  ;;  %v4093_v57 = vld [vmem:[#allocation5 + $0x2c4] ss:$8 sps:$4 sm:$0xff]   ;;  %v453_v11 = vrot.slane %v4124_v4, %v4440_v55 }
  0x91   :  { %3721 = vmatpush1.bf16.msra.mxu1 %v4022_v12 }
  0x92   :  { %2488 = vmatpush1.bf16.msra.mxu0 %v4022_v12  ;;  %3706 = vmatprep.subr.bf16.mxu1 %v4039_v20  ;;  %v4679_v12 = vrot.slane %v4083_v61, %v4440_v55  ;;  %v1280_v28 = vcombine.high %v4691_v17, %v4694_v18  ;;  %v1279_v54 = vcombine.low %v4691_v17, %v4694_v18  ;;  %v4115_v61 = vld [vmem:[#allocation2 + $0x8] ss:$14 sps:$4 sm:$0xff]   ;;  %v4130_v17 = vld [vmem:[#allocation2 + $0x1e4] ss:$14 sps:$4 sm:$0xff]  }
  0x93   :  { %2489 = vmatprep.subr.bf16.mxu0 %v4039_v20  ;;  %v1066_v20 = vcombine.low %v4643_v40, %v4648_v43  ;;  %v4717_v40 = vrot.slane %v4101_v29, %v4440_v55  ;;  %v4111_v18 = vld [vmem:[#allocation5 + $0x2e4] ss:$8 sps:$4 sm:$0xff]   ;;  %v4114_v29 = vld [vmem:[#allocation5 + $0x2f4] ss:$8 sps:$4 sm:$0xff]  }
  0x94   :  { %2314 = vmatmul.mubr.bf16.gmra.mrb[12].mxu1 %v1591_v30  ;;  %v1278_v26 = vcombine.high %v4679_v12, %v4682_v13  ;;  %v4103_v30 = vld [vmem:[#allocation2 + $0x364] ss:$14 sps:$4 sm:$0xff]   ;;  %v1615_v49 = vpack.c.bf16 %v1280_v28, %v1209_v27  ;;  %v1277_v52 = vcombine.low %v4679_v12, %v4682_v13  ;;  %v4109_v27 = vld [vmem:[#allocation5 + $0x2e0] ss:$8 sps:$4 sm:$0xff]  }
  0x95   :  { %2427 = vmatmul.mubr.bf16.gmra.mrb[12].mxu0 %v1593_v31  ;;  %3722 = vmatpush1.bf16.msra.mxu1 %v4037_v37  ;;  %v4105_v31 = vld [vmem:[#allocation2 + $0x314] ss:$14 sps:$4 sm:$0xff]   ;;  %v1607_v33 = vpack.c.bf16 %v1137_v21, %v1066_v20 }
  0x96   :  { %2490 = vmatpush1.bf16.msra.mxu0 %v4037_v37  ;;  %3707 = vmatprep.subr.bf16.mxu1 %v4042_v41  ;;  %v4108_v37 = vld [vmem:[#allocation2 + $0x368] ss:$14 sps:$4 sm:$0xff]   ;;  %v4723_v43 = vrot.slane %v4105_v31, %v4440_v55  ;;  %v1612_v63 = vpack.c.bf16 %v1277_v52, %v1206_v50  ;;  %v4133_v20 = vld [vmem:[#allocation2 + $0x200] ss:$14 sps:$4 sm:$0xff]   ;;  %v1021_v31 = vrot.slane %v4136_v24, %v4440_v55 }
  0x97   :  { %2491 = vmatprep.subr.bf16.mxu0 %v4042_v41  ;;  %2323 = vmatprep.mubr.bf16.mxu1 %v1599_v46  ;;  %v4720_v41 = vrot.slane %v4103_v30, %v4440_v55  ;;  %v4076_v46 = vld [vmem:[#allocation5 + $0x2b0] ss:$8 sps:$4 sm:$0xff]   ;;  %v1418_v51 = vrot.slane %v4108_v37, %v4440_v55  ;;  %v1007_v28 = vrot.slane %v4133_v20, %v4440_v55 }
  0x98   :  { %2436 = vmatprep.mubr.bf16.mxu0 %v1601_v47  ;;  %v1613_v47 = vpack.c.bf16 %v1278_v26, %v1207_v23  ;;  %v1351_v59 = vcombine.high %v4723_v43, %v4726_v44  ;;  %v1350_v13 = vcombine.low %v4723_v43, %v4726_v44  ;;  %v950_v23 = vrot.slane %v4130_v17, %v4440_v55  ;;  %v4148_v44 = vld [vmem:[#allocation2 + $0xb0] ss:$14 sps:$4 sm:$0xff]   ;;  %v4178_v20 = vld [vmem:[#allocation2 + $0x2a8] ss:$14 sps:$4 sm:$0xff]  }
  0x99   :  { %3723 = vmatpush1.bf16.msra.mxu1 %v4040_v45  ;;  %v1420_v58 = vcombine.high %v4717_v40, %v4720_v41  ;;  %v1419_v12 = vcombine.low %v4717_v40, %v4720_v41  ;;  %v1029_v37 = vcombine.low %v1007_v28, %v1021_v31  ;;  %v4145_v41 = vld [vmem:[#allocation2 + $0x94] ss:$14 sps:$4 sm:$0xff]   ;;  %v1220_v24 = vrot.slane %v4178_v20, %v4440_v55 }
  0x9a   :  { %2492 = vmatpush1.bf16.msra.mxu0 %v4040_v45  ;;  %3708 = vmatprep.subr.bf16.mxu1 %v4057_v53  ;;  %v4729_v45 = vrot.slane %v4107_v36, %v4440_v55 }
  0x9b   :  { %2493 = vmatprep.subr.bf16.mxu0 %v4057_v53  ;;  %v1208_v53 = vcombine.low %v4685_v15, %v4688_v16  ;;  %v1620_v5 = vpack.c.bf16 %v1420_v58, %v1349_v56  ;;  %v4127_v15 = vld [vmem:[#allocation2 + $0x1c8] ss:$14 sps:$4 sm:$0xff]  }
  0x9c   :  { %2324 = vmatmul.mubr.bf16.gmra.mrb[16].mxu1 %v1598_v0  ;;  %v1422_v60 = vcombine.high %v4729_v45, %v1418_v51  ;;  %v4094_v16 = vld [vmem:[#allocation5 + $0x2d0] ss:$8 sps:$4 sm:$0xff]   ;;  %v936_v19 = vrot.slane %v4127_v15, %v4440_v55  ;;  %v4175_v15 = vld [vmem:[#allocation2 + $0x13c] ss:$14 sps:$4 sm:$0xff]  }
  0x9d   :  { %2437 = vmatmul.mubr.bf16.gmra.mrb[16].mxu0 %v1600_v1  ;;  %3724 = vmatpush1.bf16.msra.mxu1 %v4055_v6  ;;  %v1614_v0 = vpack.c.bf16 %v1279_v54, %v1208_v53  ;;  %v4091_v1 = vld [vmem:[#allocation5 + $0x2c0] ss:$8 sps:$4 sm:$0xff]  }
  0x9e   :  { %2494 = vmatpush1.bf16.msra.mxu0 %v4055_v6  ;;  %3709 = vmatprep.subr.bf16.mxu1 %v4060_v10  ;;  %v1622_v6 = vpack.c.bf16 %v1422_v60, %v1351_v59  ;;  %v959_v30 = vcombine.high %v936_v19, %v950_v23  ;;  %v958_v36 = vcombine.low %v936_v19, %v950_v23  ;;  %v4154_v54 = vld [vmem:[#allocation2 + $0x238] ss:$14 sps:$4 sm:$0xff]   ;;  %v4160_v59 = vld [vmem:[#allocation2 + $0x270] ss:$14 sps:$4 sm:$0xff]  }
  0x9f   :  { %2495 = vmatprep.subr.bf16.mxu0 %v4060_v10  ;;  %2333 = vmatprep.mubr.bf16.mxu1 %v1606_v7  ;;  %v1348_v7 = vcombine.low %v4711_v34, %v4714_v39  ;;  %v439_v10 = vrot.slane %v4121_v2, %v4440_v55  ;;  %v1030_v34 = vcombine.high %v1007_v28, %v1021_v31  ;;  %v4112_v39 = vld [vmem:[#allocation5 + $0x2f0] ss:$8 sps:$4 sm:$0xff]   ;;  %v4187_v28 = vld [vmem:[#allocation2 + $0x2fc] ss:$14 sps:$4 sm:$0xff]  }
  0xa0   :  { %2446 = vmatprep.mubr.bf16.mxu0 %v1608_v8  ;;  %v368_v8 = vrot.slane %v4115_v61, %v4440_v55  ;;  %v1602_v50 = vpack.c.bf16 %v1029_v37, %v958_v36  ;;  %v1078_v58 = vrot.slane %v4154_v54, %v4440_v55  ;;  %v4190_v36 = vld [vmem:[#allocation2 + $0x158] ss:$14 sps:$4 sm:$0xff]   ;;  %v4193_v37 = vld [vmem:[#allocation2 + $0x174] ss:$14 sps:$4 sm:$0xff]  }
  0xa1   :  { %3725 = vmatpush1.bf16.msra.mxu1 %v4058_v14  ;;  %v1619_v25 = vpack.c.bf16 %v1419_v12, %v1348_v7  ;;  %v461_v35 = vcombine.low %v439_v10, %v453_v11  ;;  %v1603_v40 = vpack.c.bf16 %v1030_v34, %v959_v30 }
  0xa2   :  { %2496 = vmatpush1.bf16.msra.mxu0 %v4058_v14  ;;  %3710 = vmatprep.subr.bf16.mxu1 %v4075_v22  ;;  %v1421_v14 = vcombine.low %v4729_v45, %v1418_v51  ;;  %v391_v21 = vcombine.high %v368_v8, %v382_v9  ;;  %v4139_v45 = vld [vmem:[#allocation5 + $0x300] ss:$8 sps:$4 sm:$0xff]   ;;  %v581_v51 = vrot.slane %v4148_v44, %v4440_v55 }
  0xa3   :  { %2497 = vmatprep.subr.bf16.mxu0 %v4075_v22  ;;  %v462_v22 = vcombine.high %v439_v10, %v453_v11  ;;  %v808_v44 = vrot.slane %v4193_v37, %v4440_v55 }
  0xa4   :  { %2334 = vmatmul.mubr.bf16.gmra.mrb[20].mxu1 %v1605_v32  ;;  %v1621_v26 = vpack.c.bf16 %v1421_v14, %v1350_v13  ;;  %v390_v32 = vcombine.low %v368_v8, %v382_v9  ;;  %v4166_v8 = vld [vmem:[#allocation2 + $0xe8] ss:$14 sps:$4 sm:$0xff]   ;;  %v4169_v9 = vld [vmem:[#allocation2 + $0x104] ss:$14 sps:$4 sm:$0xff]   ;;  %v4172_v14 = vld [vmem:[#allocation2 + $0x120] ss:$14 sps:$4 sm:$0xff]  }
  0xa5   :  { %2447 = vmatmul.mubr.bf16.gmra.mrb[20].mxu0 %v1607_v33  ;;  %3726 = vmatpush1.bf16.msra.mxu1 %v4073_v38  ;;  %v1575_v33 = vpack.c.bf16 %v462_v22, %v391_v21  ;;  %v652_v12 = vrot.slane %v4166_v8, %v4440_v55  ;;  %v666_v13 = vrot.slane %v4169_v9, %v4440_v55  ;;  %v4181_v22 = vld [vmem:[#allocation2 + $0x2c4] ss:$14 sps:$4 sm:$0xff]   ;;  %v4153_v8 = vld [vmem:[#allocation2 + $0xd0] ss:$14 sps:$4 sm:$0x33]  }
  0xa6   :  { %2498 = vmatpush1.bf16.msra.mxu0 %v4073_v38  ;;  %3711 = vmatprep.subr.bf16.mxu1 %v4078_v42  ;;  %v4142_v38 = vld [vmem:[#allocation2 + $0x78] ss:$14 sps:$4 sm:$0xff]  }
  0xa7   :  { %2499 = vmatprep.subr.bf16.mxu0 %v4078_v42  ;;  %2343 = vmatprep.mubr.bf16.mxu1 %v1613_v47  ;;  %v4141_v42 = vld [vmem:[#allocation5 + $0x304] ss:$8 sps:$4 sm:$0xff]   ;;  %v510_v43 = vrot.slane %v4142_v38, %v4440_v55  ;;  %v675_v17 = vcombine.high %v652_v12, %v666_v13  ;;  %v674_v19 = vcombine.low %v652_v12, %v666_v13 }
  0xa8   :  { %2456 = vmatprep.mubr.bf16.mxu0 %v1615_v49  ;;  %v4151_v47 = vld [vmem:[#allocation2 + $0xcc] ss:$14 sps:$4 sm:$0xff]   ;;  %v1574_v49 = vpack.c.bf16 %v461_v35, %v390_v32  ;;  %v1305_v32 = vrot.slane %v4187_v28, %v4440_v55 }
  0xa9   :  { %3727 = vmatpush1.bf16.msra.mxu1 %v4076_v46  ;;  %v595_v53 = vrot.slane %v4151_v47, %v4440_v55  ;;  %v4117_v38 = vld [vmem:[#allocation2 + $0xc] ss:$14 sps:$4 sm:$0x33]  }
  0xaa   :  { %2500 = vmatpush1.bf16.msra.mxu0 %v4076_v46  ;;  %3712 = vmatprep.subr.bf16.mxu1 %v4093_v57  ;;  %v524_v46 = vrot.slane %v4145_v41, %v4440_v55  ;;  %v4199_v47 = vld [vmem:[#allocation2 + $0x1ac] ss:$14 sps:$4 sm:$0xff]  }
  0xab   :  { %2501 = vmatprep.subr.bf16.mxu0 %v4093_v57  ;;  %v604_v56 = vcombine.high %v581_v51, %v595_v53  ;;  %v4157_v57 = vld [vmem:[#allocation2 + $0x254] ss:$14 sps:$4 sm:$0xff]   ;;  %v603_v61 = vcombine.low %v581_v51, %v595_v53  ;;  %v879_v51 = vrot.slane %v4199_v47, %v4440_v55  ;;  %v375_v53 = vrot.slane %v4117_v38, %v4440_v55 }
  0xac   :  { %2344 = vmatmul.mubr.bf16.gmra.mrb[24].mxu1 %v1612_v63  ;;  %v533_v52 = vcombine.high %v510_v43, %v524_v46  ;;  %v532_v60 = vcombine.low %v510_v43, %v524_v46  ;;  %v1092_v63 = vrot.slane %v4157_v57, %v4440_v55  ;;  %v794_v43 = vrot.slane %v4190_v36, %v4440_v55  ;;  %v4126_v46 = vld [vmem:[#allocation2 + $0x60] ss:$14 sps:$4 sm:$0x33]   ;;  %v4195_v36 = vld [vmem:[#allocation2 + $0x178] ss:$14 sps:$4 sm:$0x33]  }
  0xad   :  { %2457 = vmatmul.mubr.bf16.gmra.mrb[24].mxu0 %v1614_v0  ;;  %3728 = vmatpush1.bf16.msra.mxu1 %v4091_v1  ;;  %v4163_v0 = vld [vmem:[#allocation2 + $0x28c] ss:$14 sps:$4 sm:$0xff]   ;;  %v4132_v47 = vld [vmem:[#allocation2 + $0x1e8] ss:$14 sps:$4 sm:$0x33]  }
  0xae   :  { %2502 = vmatpush1.bf16.msra.mxu0 %v4091_v1  ;;  %3713 = vmatprep.subr.bf16.mxu1 %v4096_v3  ;;  %v1582_v62 = vpack.c.bf16 %v604_v56, %v533_v52  ;;  %v1149_v1 = vrot.slane %v4160_v59, %v4440_v55  ;;  %v1101_v2 = vcombine.high %v1078_v58, %v1092_v63  ;;  %v4202_v56 = vld [vmem:[#allocation2 + $0x318] ss:$14 sps:$4 sm:$0xff]  }
  0xaf   :  { %2503 = vmatprep.subr.bf16.mxu0 %v4096_v3  ;;  %2353 = vmatprep.mubr.bf16.mxu1 %v1620_v5  ;;  %v1163_v3 = vrot.slane %v4163_v0, %v4440_v55  ;;  %v1100_v4 = vcombine.low %v1078_v58, %v1092_v63  ;;  %v1581_v5 = vpack.c.bf16 %v603_v61, %v532_v60  ;;  %v4205_v60 = vld [vmem:[#allocation2 + $0x334] ss:$14 sps:$4 sm:$0xff]   ;;  %v4208_v63 = vld [vmem:[#allocation2 + $0x350] ss:$14 sps:$4 sm:$0xff]  }
  0xb0   :  { %2466 = vmatprep.mubr.bf16.mxu0 %v1622_v6  ;;  %v816_v52 = vcombine.low %v794_v43, %v808_v44  ;;  %v460_v58 = vrot.slane %v4126_v46, %v4440_v55  ;;  %v1433_v9 = vrot.slane %v4208_v63, %v4440_v55  ;;  %v4129_v46 = vld [vmem:[#allocation2 + $0x1cc] ss:$14 sps:$4 sm:$0x33]   ;;  %v4162_v63 = vld [vmem:[#allocation2 + $0x274] ss:$14 sps:$4 sm:$0x33]  }
  0xb1   :  { %3729 = vmatpush1.bf16.msra.mxu1 %v4094_v16  ;;  %v1172_v6 = vcombine.high %v1149_v1, %v1163_v3  ;;  %v1171_v7 = vcombine.low %v1149_v1, %v1163_v3  ;;  %v1376_v1 = vrot.slane %v4205_v60, %v4440_v55  ;;  %v4159_v60 = vld [vmem:[#allocation2 + $0x258] ss:$14 sps:$4 sm:$0x33]  }
  0xb2   :  { %2504 = vmatpush1.bf16.msra.mxu0 %v4094_v16  ;;  %3714 = vmatprep.subr.bf16.mxu1 %v4111_v18  ;;  %v723_v16 = vrot.slane %v4172_v14, %v4440_v55 }
  0xb3   :  { %2505 = vmatprep.subr.bf16.mxu0 %v4111_v18  ;;  %v1610_v10 = vpack.c.bf16 %v1172_v6, %v1101_v2  ;;  %v1609_v11 = vpack.c.bf16 %v1171_v7, %v1100_v4  ;;  %v737_v18 = vrot.slane %v4175_v15, %v4440_v55  ;;  %v4211_v2 = vld [vmem:[#allocation2 + $0x36c] ss:$14 sps:$4 sm:$0xff]   ;;  %v4147_v6 = vld [vmem:[#allocation2 + $0x98] ss:$14 sps:$4 sm:$0x33]  }
  0xb4   :  { %2354 = vmatmul.mubr.bf16.gmra.mrb[28].mxu1 %v1619_v25  ;;  %v4184_v25 = vld [vmem:[#allocation2 + $0x2e0] ss:$14 sps:$4 sm:$0xff]   ;;  %v1447_v12 = vrot.slane %v4211_v2, %v4440_v55 }
  0xb5   :  { %2467 = vmatmul.mubr.bf16.gmra.mrb[28].mxu0 %v1621_v26  ;;  %3730 = vmatpush1.bf16.msra.mxu1 %v4109_v27  ;;  %v746_v21 = vcombine.high %v723_v16, %v737_v18  ;;  %v745_v23 = vcombine.low %v723_v16, %v737_v18  ;;  %v1291_v30 = vrot.slane %v4184_v25, %v4440_v55  ;;  %v4150_v7 = vld [vmem:[#allocation2 + $0xb4] ss:$14 sps:$4 sm:$0x33]   ;;  %v4358_v16 = vmov 0  }
  0xb6   :  { %2506 = vmatpush1.bf16.msra.mxu0 %v4109_v27  ;;  %3715 = vmatprep.subr.bf16.mxu1 %v4114_v29  ;;  %v1234_v27 = vrot.slane %v4181_v22, %v4440_v55  ;;  %v1456_v14 = vcombine.high %v1433_v9, %v1447_v12  ;;  %v1455_v15 = vcombine.low %v1433_v9, %v1447_v12  ;;  %v4171_v25 = vld [vmem:[#allocation2 + $0x108] ss:$14 sps:$4 sm:$0x33]   ;;  %v4189_v9 = vld [vmem:[#allocation2 + $0x300] ss:$14 sps:$4 sm:$0x33]  }
  0xb7   :  { %2507 = vmatprep.subr.bf16.mxu0 %v4114_v29  ;;  %2509 = vmatprep.mubr.bf16.mxu0 %v1575_v33  ;;  %v1589_v26 = vpack.c.bf16 %v746_v21, %v675_v17  ;;  %v1588_v29 = vpack.c.bf16 %v745_v23, %v674_v19  ;;  %v1314_v34 = vcombine.high %v1291_v30, %v1305_v32 }
  0xb8   :  { %2549 = vmatprep.mubr.bf16.mxu1 %v1603_v40  ;;  %v1243_v31 = vcombine.high %v1220_v24, %v1234_v27  ;;  %v1242_v33 = vcombine.low %v1220_v24, %v1234_v27  ;;  %v1313_v35 = vcombine.low %v1291_v30, %v1305_v32  ;;  %v4123_v40 = vld [vmem:[#allocation2 + $0x44] ss:$14 sps:$4 sm:$0x33]   ;;  %v531_v21 = vrot.slane %v4147_v6, %v4440_v55  ;;  %v4168_v24 = vld [vmem:[#allocation2 + $0xec] ss:$14 sps:$4 sm:$0x33]  }
  0xb9   :  { %3731 = vmatpush1.bf16.msra.mxu1 %v4112_v39  ;;  %v446_v57 = vrot.slane %v4123_v40, %v4440_v55  ;;  %v588_v22 = vrot.slane %v4150_v7, %v4440_v55  ;;  %v602_v23 = vrot.slane %v4153_v8, %v4440_v55  ;;  %v4177_v27 = vld [vmem:[#allocation2 + $0x140] ss:$14 sps:$4 sm:$0x33]   ;;  %v659_v30 = vrot.slane %v4168_v24, %v4440_v55  ;;  %v4201_v40 = vld [vmem:[#allocation2 + $0x1b0] ss:$14 sps:$4 sm:$0x33]  }
  0xba   :  { %2508 = vmatpush1.bf16.msra.mxu0 %v4112_v39  ;;  %v4120_v39 = vld [vmem:[#allocation2 + $0x28] ss:$14 sps:$4 sm:$0x33]   ;;  %v1617_v41 = vpack.c.bf16 %v1314_v34, %v1243_v31  ;;  %v673_v31 = vrot.slane %v4171_v25, %v4440_v55  ;;  %v4180_v6 = vld [vmem:[#allocation2 + $0x2ac] ss:$14 sps:$4 sm:$0x33]  }
  0xbb   :  { %2590 = vmatprep.subr.bf16.mxu0 %v4141_v42  ;;  %v1616_v42 = vpack.c.bf16 %v1313_v35, %v1242_v33  ;;  %v389_v54 = vrot.slane %v4120_v39, %v4440_v55  ;;  %v744_v33 = vrot.slane %v4177_v27, %v4440_v55  ;;  %v4192_v35 = vld [vmem:[#allocation2 + $0x15c] ss:$14 sps:$4 sm:$0x33]   ;;  %v4198_v39 = vld [vmem:[#allocation2 + $0x194] ss:$14 sps:$4 sm:$0x33]   ;;  %v1227_v12 = vrot.slane %v4180_v6, %v4440_v55 }
  0xbc   :  { %2550 = vmatmul.mubr.bf16.vlgmr.msra.gmra.mrb[32].mxu1 %v1602_v50  ;;  %v817_v50 = vcombine.high %v794_v43, %v808_v44  ;;  %v676_v37 = vcombine.low %v659_v30, %v673_v31  ;;  %v815_v43 = vrot.slane %v4195_v36, %v4440_v55  ;;  %v872_v44 = vrot.slane %v4198_v39, %v4440_v55  ;;  %v4183_v7 = vld [vmem:[#allocation2 + $0x2c8] ss:$14 sps:$4 sm:$0x33]   ;;  %v4186_v8 = vld [vmem:[#allocation2 + $0x2e4] ss:$14 sps:$4 sm:$0x33]  }
  0xbd   :  { %2510 = vmatmul.mubr.bf16.vlgmr.msra.gmra.mrb[0].mxu0 %v1574_v49  ;;  %2559 = vmatprep.mubr.bf16.mxu1 %v1610_v10  ;;  %v392_v4 = vcombine.low %v375_v53, %v389_v54  ;;  %v463_v10 = vcombine.low %v446_v57, %v460_v58  ;;  %v943_v53 = vrot.slane %v4129_v46, %v4440_v55  ;;  %v4218_v36 = vld [vmem:[#allocation7 + $0x50] sm:$0xff]   ;;  %v4221_v39 = vld [vmem:[#allocation7 + $0x18] sm:$0xff]  }
  0xbe   :  { %2591 = vmatpush1.bf16.msra.mxu0 %v4139_v45  ;;  %2519 = vmatprep.mubr.bf16.mxu0 %v1582_v62  ;;  %v4196_v45 = vld [vmem:[#allocation2 + $0x190] ss:$14 sps:$4 sm:$0xff]   ;;  %v1362_v62 = vrot.slane %v4202_v56, %v4440_v55  ;;  %v957_v54 = vrot.slane %v4132_v47, %v4440_v55  ;;  %v4229_v46 = vld [vmem:[#allocation7 + $0x38] sm:$0xff]  }
  0xbf   :  { %v865_v49 = vrot.slane %v4196_v45, %v4440_v55  ;;  %v1576_v19 = vpack.c.bf16 %v463_v10, %v392_v4  ;;  %v886_v45 = vrot.slane %v4201_v40, %v4440_v55  ;;  %v1156_v4 = vrot.slane %v4162_v63, %v4440_v55  ;;  %v4223_v40 = vld [vmem:[#allocation7 + $0x20] sm:$0xff]  }
  0xc0   :  { %v1384_v13 = vcombine.low %v1362_v62, %v1376_v1 }
  0xc1   :  { %v888_v59 = vcombine.high %v865_v49, %v879_v51  ;;  %v887_v61 = vcombine.low %v865_v49, %v879_v51  ;;  %v4135_v49 = vld [vmem:[#allocation2 + $0x204] ss:$14 sps:$4 sm:$0x33]  }
  0xc2   :  { %v1623_v18 = vpack.c.bf16 %v1455_v15, %v1384_v13  ;;  %v1014_v56 = vrot.slane %v4135_v49, %v4440_v55  ;;  %v1241_v13 = vrot.slane %v4183_v7, %v4440_v55  ;;  %v1312_v15 = vrot.slane %v4189_v9, %v4440_v55 }
  0xc3   :  { %v1596_v0 = vpack.c.bf16 %v888_v59, %v817_v50  ;;  %v1595_v3 = vpack.c.bf16 %v887_v61, %v816_v52  ;;  %v4138_v50 = vld [vmem:[#allocation2 + $0x220] ss:$14 sps:$4 sm:$0x33]   ;;  %v889_v52 = vcombine.low %v872_v44, %v886_v45  ;;  %v4156_v59 = vld [vmem:[#allocation2 + $0x23c] ss:$14 sps:$4 sm:$0x33]   ;;  %v960_v61 = vcombine.low %v943_v53, %v957_v54 }
  0xc4   :  { %2560 = vmatmul.mubr.bf16.gmra.mrb[36].mxu1 %v1609_v11  ;;  %v1385_v11 = vcombine.high %v1362_v62, %v1376_v1  ;;  %v1028_v57 = vrot.slane %v4138_v50, %v4440_v55  ;;  %v1085_v2 = vrot.slane %v4156_v59, %v4440_v55  ;;  %v4227_v44 = vld [vmem:[#allocation7 + $0x30] sm:$0xff]   ;;  %v4228_v45 = vld [vmem:[#allocation7 + $0x78] sm:$0xff]  }
  0xc5   :  { %2520 = vmatmul.mubr.bf16.gmra.mrb[4].mxu0 %v1581_v5  ;;  %2569 = vmatprep.mubr.bf16.mxu1 %v1617_v41  ;;  %v4144_v5 = vld [vmem:[#allocation2 + $0x7c] ss:$14 sps:$4 sm:$0x33]  }
  0xc6   :  { %2529 = vmatprep.mubr.bf16.mxu0 %v1589_v26  ;;  %v1624_v17 = vpack.c.bf16 %v1456_v14, %v1385_v11  ;;  %v517_v20 = vrot.slane %v4144_v5, %v4440_v55  ;;  %v4174_v26 = vld [vmem:[#allocation2 + $0x124] ss:$14 sps:$4 sm:$0x33]   ;;  %v1031_v62 = vcombine.low %v1014_v56, %v1028_v57  ;;  %v1298_v14 = vrot.slane %v4186_v8, %v4440_v55 }
  0xc7   :  { %v730_v32 = vrot.slane %v4174_v26, %v4440_v55 }
  0xc8   :  { %v534_v28 = vcombine.low %v517_v20, %v531_v21  ;;  %v1604_v1 = vpack.c.bf16 %v1031_v62, %v960_v61  ;;  %v1244_v20 = vcombine.low %v1227_v12, %v1241_v13  ;;  %v1315_v21 = vcombine.low %v1298_v14, %v1312_v15 }
  0xc9   :  { %v747_v38 = vcombine.low %v730_v32, %v744_v33  ;;  %v4214_v32 = vld [vmem:[#allocation7 + $0x40] sm:$0xff]   ;;  %v1728_v62 = vsub.s32 0, %v4437_v48 }
  0xca   :  { %v1618_v24 = vpack.c.bf16 %v1315_v21, %v1244_v20  ;;  %v4215_v33 = vld [vmem:[#allocation7] sm:$0xff]   ;;  %3636 = vmatprep.subr.bf16.mxu1 %v4214_v32 }
  0xcb   :  { %v1590_v41 = vpack.c.bf16 %v747_v38, %v676_v37  ;;  %3637 = vmatpush3.bf16.msra.mxu1 %v4215_v33  ;;  %v4219_v37 = vld [vmem:[#allocation7 + $0x10] sm:$0xff]   ;;  %v4220_v38 = vld [vmem:[#allocation7 + $0x58] sm:$0xff]  }
  0xcc   :  { %2570 = vmatmul.mubr.bf16.gmra.mrb[40].mxu1 %v1616_v42  ;;  %v801_v42 = vrot.slane %v4192_v35, %v4440_v55  ;;  %v4217_v35 = vld [vmem:[#allocation7 + $0x8] sm:$0xff]  }
  0xcd   :  { %2530 = vmatmul.mubr.bf16.gmra.mrb[8].mxu0 %v1588_v29  ;;  %2579 = vmatprep.mubr.bf16.mxu1 %v1624_v17  ;;  %v605_v29 = vcombine.low %v588_v22, %v602_v23  ;;  %v4210_v22 = vld [vmem:[#allocation2 + $0x354] ss:$14 sps:$4 sm:$0x33]   ;;  %v4213_v23 = vld [vmem:[#allocation2 + $0x370] ss:$14 sps:$4 sm:$0x33]  }
  0xce   :  { %2539 = vmatprep.mubr.bf16.mxu0 %v1596_v0  ;;  %v818_v51 = vcombine.low %v801_v42, %v815_v43  ;;  %v4165_v0 = vld [vmem:[#allocation2 + $0x290] ss:$14 sps:$4 sm:$0x33]   ;;  %v1440_v27 = vrot.slane %v4210_v22, %v4440_v55  ;;  %v4226_v43 = vld [vmem:[#allocation7 + $0x70] sm:$0xff]  }
  0xcf   :  { %v1583_v34 = vpack.c.bf16 %v605_v29, %v534_v28  ;;  %v1170_v5 = vrot.slane %v4165_v0, %v4440_v55  ;;  %v1454_v28 = vrot.slane %v4213_v23, %v4440_v55  ;;  %v4225_v42 = vld [vmem:[#allocation7 + $0x28] sm:$0xff]   ;;  %v1724_v0 = vld [vmem:[%s5053_s2] sm:$0x3] }
  0xd0   :  { %v1597_v58 = vpack.c.bf16 %v889_v52, %v818_v51 }
  0xd1   :  { %v1173_v11 = vcombine.low %v1156_v4, %v1170_v5  ;;  %v1457_v30 = vcombine.low %v1440_v27, %v1454_v28  ;;  %v4871_v4 = vrot.slane %v1724_v0, %v1728_v62 }
  0xd4   :  { %2580 = vmatmul.mubr.bf16.gmra.mrb[44].mxu1 %v1623_v18  ;;  %v4204_v18 = vld [vmem:[#allocation2 + $0x31c] ss:$14 sps:$4 sm:$0x33]  }
  0xd5   :  { %2540 = vmatmul.mubr.bf16.gmra.mrb[12].mxu0 %v1595_v3  ;;  %v1099_v3 = vrot.slane %v4159_v60, %v4440_v55  ;;  %v1369_v25 = vrot.slane %v4204_v18, %v4440_v55 }
  0xd6   :  { %2622 = vmatprep.mubr.bf16.mxu0 %v4358_v16 }
  0xd7   :  { %v1102_v10 = vcombine.low %v1085_v2, %v1099_v3 }
  0xd9   :  { %v1611_v17 = vpack.c.bf16 %v1173_v11, %v1102_v10 }
  0xdd   :  { %3579 = vmatmul.mubr.msk.bf16.vlgmr.msra.gmra.mrb[0].mxu0 %vm2226_vm0, %v1576_v19  ;;  %v4207_v19 = vld [vmem:[#allocation2 + $0x338] ss:$14 sps:$4 sm:$0x33]  }
  0xde   :  { %2632 = vmatprep.mubr.bf16.mxu0 %v4358_v16  ;;  %v1383_v26 = vrot.slane %v4207_v19, %v4440_v55 }
  0xe0   :  { %v1386_v29 = vcombine.low %v1369_v25, %v1383_v26 }
  0xe2   :  { %v1625_v31 = vpack.c.bf16 %v1457_v30, %v1386_v29 }
  0xe5   :  { %3580 = vmatmul.mubr.msk.bf16.gmra.mrb[4].mxu0 %vm2226_vm0, %v1583_v34  ;;  %v4216_v34 = vld [vmem:[#allocation7 + $0x48] sm:$0xff]  }
  0xe6   :  { %2642 = vmatprep.mubr.bf16.mxu0 %v4358_v16  ;;  %3638 = vmatprep.subr.bf16.mxu1 %v4216_v34 }
  0xe7   :  { %3639 = vmatpush3.bf16.msra.mxu1 %v4217_v35 }
  0xe8   :  { %3640 = vmatprep.subr.bf16.mxu1 %v4218_v36 }
  0xeb   :  { %3641 = vmatpush3.bf16.msra.mxu1 %v4219_v37 }
  0xec   :  { %3642 = vmatprep.subr.bf16.mxu1 %v4220_v38 }
  0xed   :  { %3581 = vmatmul.mubr.msk.bf16.gmra.mrb[8].mxu0 %vm2226_vm0, %v1590_v41  ;;  %v4224_v41 = vld [vmem:[#allocation7 + $0x68] sm:$0xff]  }
  0xee   :  { %2652 = vmatprep.mubr.bf16.mxu0 %v4358_v16 }
  0xef   :  { %3643 = vmatpush3.bf16.msra.mxu1 %v4221_v39 }
  0xf5   :  { %3582 = vmatmul.mubr.msk.bf16.gmra.mrb[12].mxu0 %vm2226_vm0, %v1597_v58 }
  0xf6   :  { %2662 = vmatprep.mubr.bf16.mxu0 %v4358_v16 }
  0xfd   :  { %3583 = vmatmul.mubr.msk.bf16.gmra.mrb[32].mxu0 %vm2226_vm0, %v1604_v1  ;;  %v1732_v1 = vsub.s32 1, %v4437_v48 }
  0xfe   :  { %2672 = vmatprep.mubr.bf16.mxu0 %v4358_v16 }
  0xff   :  { %v4873_v5 = vrot.slane %v1724_v0, %v1732_v1 }
 0x105   :  { %3584 = vmatmul.mubr.msk.bf16.gmra.mrb[36].mxu0 %vm2226_vm0, %v1611_v17 }
 0x106   :  { %2682 = vmatprep.mubr.bf16.mxu0 %v4358_v16 }
 0x10d   :  { %3585 = vmatmul.mubr.msk.bf16.gmra.mrb[40].mxu0 %vm2226_vm0, %v1618_v24 }
 0x10e   :  { %2692 = vmatprep.mubr.bf16.mxu0 %v4358_v16  ;;  %v4222_v16 = vld [vmem:[#allocation7 + $0x60] sm:$0xff]  }
 0x10f   :  { %3644 = vmatprep.subr.bf16.mxu1 %v4222_v16 }
 0x110   :  { %3645 = vmatpush3.bf16.msra.mxu1 %v4223_v40 }
 0x111   :  { %3646 = vmatprep.subr.bf16.mxu1 %v4224_v41 }
 0x114   :  { %3647 = vmatpush3.bf16.msra.mxu1 %v4225_v42 }
 0x115   :  { %3586 = vmatmul.mubr.msk.bf16.gmra.mrb[44].mxu0 %vm2226_vm0, %v1625_v31  ;;  %3648 = vmatprep.subr.bf16.mxu1 %v4226_v43 }
 0x118   :  { %3649 = vmatpush3.bf16.msra.mxu1 %v4227_v44 }
 0x119   :  { %3650 = vmatprep.subr.bf16.mxu1 %v4228_v45 }
 0x11c   :  { %3651 = vmatpush3.bf16.msra.mxu1 %v4229_v46 }
 0x14f   :  { %v4834_v47 = vpop.f32.mrb[0].mxu1 }
 0x150   :  { %v4836_v49 = vpop.f32.mrb[1].mxu1 }
 0x151   :  { %v4838_v50 = vpop.f32.mrb[2].mxu1 }
 0x152   :  { %v4840_v51 = vpop.f32.mrb[3].mxu1 }
 0x157   :  { %v4842_v52 = vpop.f32.mrb[4].mxu1 }
 0x158   :  { %v4844_v53 = vpop.f32.mrb[5].mxu1 }
 0x159   :  { %v4846_v54 = vpop.f32.mrb[6].mxu1 }
 0x15a   :  { %v4848_v56 = vpop.f32.mrb[7].mxu1 }
 0x15f   :  { %v4850_v57 = vpop.f32.mrb[8].mxu1 }
 0x160   :  { %v4852_v58 = vpop.f32.mrb[9].mxu1 }
 0x161   :  { %v4854_v59 = vpop.f32.mrb[10].mxu1 }
 0x162   :  { %v4856_v60 = vpop.f32.mrb[11].mxu1 }
 0x167   :  { %v4858_v61 = vpop.f32.mrb[12].mxu1 }
 0x168   :  { %v4861_v63 = vpop.f32.mrb[13].mxu1 }
 0x169   :  { %v4867_v2 = vpop.f32.mrb[14].mxu1 }
 0x16a   :  { %v4869_v3 = vpop.f32.mrb[15].mxu1 }
 0x16f   :  { %v2325_v6 = vpop.f32.mrb[16].mxu1 }
 0x170   :  { %v2438_v7 = vpop.f32.mrb[16].mxu0  ;;  %v2326_v8 = vadd.f32 %v2325_v6, %v4871_v4  ;;  %v2327_v9 = vpop.f32.mrb[17].mxu1 }
 0x171   :  { %v2440_v10 = vpop.f32.mrb[17].mxu0  ;;  %v2328_v11 = vadd.f32 %v2327_v9, %v4873_v5  ;;  %v2329_v12 = vpop.f32.mrb[18].mxu1 }
 0x172   :  { %v2442_v13 = vpop.f32.mrb[18].mxu0  ;;  %v2439_v14 = vadd.f32 %v2438_v7, %v2326_v8  ;;  %v2330_v48 = vadd.f32 %v2329_v12, %v4871_v4  ;;  %v2331_v15 = vpop.f32.mrb[19].mxu1 }
 0x173   :  { %v2444_v17 = vpop.f32.mrb[19].mxu0  ;;  %v2441_v18 = vadd.f32 %v2440_v10, %v2328_v11  ;;  %v2332_v19 = vadd.f32 %v2331_v15, %v4873_v5 }
 0x174   :  { %v2443_v20 = vadd.f32 %v2442_v13, %v2330_v48 }
 0x175   :  { %v2445_v21 = vadd.f32 %v2444_v17, %v2332_v19 }
 0x177   :  { %v2335_v22 = vpop.f32.mrb[20].mxu1 }
 0x178   :  { %v2448_v23 = vpop.f32.mrb[20].mxu0  ;;  %v2336_v24 = vadd.f32 %v2335_v22, %v4871_v4  ;;  %v2337_v25 = vpop.f32.mrb[21].mxu1 }
 0x179   :  { %v2450_v26 = vpop.f32.mrb[21].mxu0  ;;  %v2338_v27 = vadd.f32 %v2337_v25, %v4873_v5  ;;  %v2339_v28 = vpop.f32.mrb[22].mxu1 }
 0x17a   :  { %v2452_v29 = vpop.f32.mrb[22].mxu0  ;;  %v2449_v30 = vadd.f32 %v2448_v23, %v2336_v24  ;;  %v2340_v31 = vadd.f32 %v2339_v28, %v4871_v4  ;;  %v2341_v32 = vpop.f32.mrb[23].mxu1 }
 0x17b   :  { %v2454_v33 = vpop.f32.mrb[23].mxu0  ;;  %v2451_v34 = vadd.f32 %v2450_v26, %v2338_v27  ;;  %v2342_v35 = vadd.f32 %v2341_v32, %v4873_v5 }
 0x17c   :  { %v2453_v36 = vadd.f32 %v2452_v29, %v2340_v31 }
 0x17d   :  { %v2455_v37 = vadd.f32 %v2454_v33, %v2342_v35 }
 0x17f   :  { %v2345_v38 = vpop.f32.mrb[24].mxu1 }
 0x180   :  { %v2458_v39 = vpop.f32.mrb[24].mxu0  ;;  %v2346_v16 = vadd.f32 %v2345_v38, %v4871_v4  ;;  %v2347_v40 = vpop.f32.mrb[25].mxu1 }
 0x181   :  { %v2460_v41 = vpop.f32.mrb[25].mxu0  ;;  %v2348_v42 = vadd.f32 %v2347_v40, %v4873_v5  ;;  %v2349_v43 = vpop.f32.mrb[26].mxu1 }
 0x182   :  { %v2462_v44 = vpop.f32.mrb[26].mxu0  ;;  %v2459_v45 = vadd.f32 %v2458_v39, %v2346_v16  ;;  %v2350_v46 = vadd.f32 %v2349_v43, %v4871_v4  ;;  %v2351_v62 = vpop.f32.mrb[27].mxu1 }
 0x183   :  { %v2464_v0 = vpop.f32.mrb[27].mxu0  ;;  %v2461_v1 = vadd.f32 %v2460_v41, %v2348_v42  ;;  %v2352_v6 = vadd.f32 %v2351_v62, %v4873_v5 }
 0x184   :  { %v2463_v7 = vadd.f32 %v2462_v44, %v2350_v46 }
 0x185   :  { %v2465_v8 = vadd.f32 %v2464_v0, %v2352_v6 }
 0x187   :  { %v2355_v9 = vpop.f32.mrb[28].mxu1 }
 0x188   :  { %v2468_v10 = vpop.f32.mrb[28].mxu0  ;;  %v2356_v11 = vadd.f32 %v2355_v9, %v4871_v4  ;;  %v2357_v12 = vpop.f32.mrb[29].mxu1 }
 0x189   :  { %v2470_v13 = vpop.f32.mrb[29].mxu0  ;;  %v2358_v48 = vadd.f32 %v2357_v12, %v4873_v5  ;;  %v2359_v15 = vpop.f32.mrb[30].mxu1 }
 0x18a   :  { %v2472_v17 = vpop.f32.mrb[30].mxu0  ;;  %v2469_v19 = vadd.f32 %v2468_v10, %v2356_v11  ;;  %v2360_v22 = vadd.f32 %v2359_v15, %v4871_v4  ;;  %v2361_v23 = vpop.f32.mrb[31].mxu1 }
 0x18b   :  { %v2474_v24 = vpop.f32.mrb[31].mxu0  ;;  %v2471_v25 = vadd.f32 %v2470_v13, %v2358_v48  ;;  %v2362_v26 = vadd.f32 %v2361_v23, %v4873_v5 }
 0x18c   :  { %v2473_v27 = vadd.f32 %v2472_v17, %v2360_v22 }
 0x18d   :  { %v2475_v28 = vadd.f32 %v2474_v24, %v2362_v26 }
 0x18f   :  { %v2551_v29 = vpop.f32.mrb[32].mxu1 }
 0x190   :  { %v4891_v31 = vadd.f32 %v2551_v29, %v2439_v14  ;;  %v2553_v32 = vpop.f32.mrb[33].mxu1 }
 0x191   :  { %v4893_v33 = vadd.f32 %v2553_v32, %v2441_v18  ;;  %v2555_v35 = vpop.f32.mrb[34].mxu1 }
 0x192   :  { %v4895_v38 = vadd.f32 %v2555_v35, %v2443_v20  ;;  %v2557_v39 = vpop.f32.mrb[35].mxu1 }
 0x193   :  { %v4897_v16 = vadd.f32 %v2557_v39, %v2445_v21 }
 0x197   :  { %v2561_v40 = vpop.f32.mrb[36].mxu1 }
 0x198   :  { %v4899_v41 = vadd.f32 %v2561_v40, %v2449_v30  ;;  %v2563_v42 = vpop.f32.mrb[37].mxu1  ;;  %v2298_v40 = vadd.f32 %v4844_v53, %v4873_v5  ;;  %v2302_v53 = vadd.f32 %v4848_v56, %v4873_v5 }
 0x199   :  { %v4901_v43 = vadd.f32 %v2563_v42, %v2451_v34  ;;  %v2565_v44 = vpop.f32.mrb[38].mxu1 }
 0x19a   :  { %v4903_v46 = vadd.f32 %v2565_v44, %v2453_v36  ;;  %v2567_v14 = vpop.f32.mrb[39].mxu1  ;;  %v2286_v36 = vadd.f32 %v4834_v47, %v4871_v4  ;;  %v2292_v47 = vadd.f32 %v4840_v51, %v4873_v5 }
 0x19b   :  { %v4905_v62 = vadd.f32 %v2567_v14, %v2455_v37 }
 0x19f   :  { %v2571_v18 = vpop.f32.mrb[40].mxu1 }
 0x1a0   :  { %v4907_v0 = vadd.f32 %v2571_v18, %v2459_v45  ;;  %v2573_v20 = vpop.f32.mrb[41].mxu1  ;;  %v2288_v45 = vadd.f32 %v4836_v49, %v4873_v5 }
 0x1a1   :  { %v4909_v6 = vadd.f32 %v2573_v20, %v2461_v1  ;;  %v2575_v21 = vpop.f32.mrb[42].mxu1 }
 0x1a2   :  { %v4911_v9 = vadd.f32 %v2575_v21, %v2463_v7  ;;  %v2577_v30 = vpop.f32.mrb[43].mxu1  ;;  %v2290_v7 = vadd.f32 %v4838_v50, %v4871_v4  ;;  %v2296_v50 = vadd.f32 %v4842_v52, %v4871_v4 }
 0x1a3   :  { %v4913_v10 = vadd.f32 %v2577_v30, %v2465_v8 }
 0x1a7   :  { %v2581_v34 = vpop.f32.mrb[44].mxu1 }
 0x1a8   :  { %v4917_v11 = vadd.f32 %v2581_v34, %v2469_v19  ;;  %v2583_v37 = vpop.f32.mrb[45].mxu1  ;;  %v2300_v34 = vadd.f32 %v4846_v54, %v4871_v4 }
 0x1a9   :  { %v4921_v12 = vadd.f32 %v2583_v37, %v2471_v25  ;;  %v2585_v1 = vpop.f32.mrb[46].mxu1 }
 0x1aa   :  { %v4925_v48 = vadd.f32 %v2585_v1, %v2473_v27  ;;  %v2587_v8 = vpop.f32.mrb[47].mxu1 }
 0x1ab   :  { %v4929_v19 = vadd.f32 %v2587_v8, %v2475_v28 }
 0x1b0   :  { %v2624_v13 = vpop.f32.mrb[0].mxu0 }
 0x1b1   :  { %v3733_v15 = vadd.f32 %v2624_v13, %v2286_v36  ;;  %v2626_v17 = vpop.f32.mrb[1].mxu0 }
 0x1b2   :  { %v3735_v22 = vadd.f32 %v2626_v17, %v2288_v45  ;;  %v2628_v23 = vpop.f32.mrb[2].mxu0 }
 0x1b3   :  { %v3737_v49 = vadd.f32 %v2628_v23, %v2290_v7  ;;  %v2630_v24 = vpop.f32.mrb[3].mxu0  ;;  %v3151_v27 = vmax.f32 %v3733_v15, 0.0  ;;  %v2306_v23 = vadd.f32 %v4850_v57, %v4871_v4 }
 0x1b4   :  { %v2735_v25 = vcombine.low %v3733_v15, %v3735_v22  ;;  %v2736_v26 = vcombine.high %v3733_v15, %v3735_v22  ;;  %v3739_v29 = vadd.f32 %v2630_v24, %v2292_v47  ;;  %v3152_v42 = vmax.f32 %v3735_v22, 0.0 }
 0x1b5   :  { %v3153_v32 = vmax.f32 %v3737_v49, 0.0 }
 0x1b6   :  { %v2743_v35 = vrot.slane %v2735_v25, %v4440_v55  ;;  %v2750_v39 = vrot.slane %v2736_v26, %v4440_v55  ;;  %3587 = vst.sshfl [vmem:[#allocation8] sm:$0x33 pattern:$0x76325410] %v2735_v25  ;;  %v2753_v51 = vcombine.low %v3737_v49, %v3739_v29  ;;  %v2754_v28 = vcombine.high %v3737_v49, %v3739_v29 }
 0x1b7   :  { %3588 = vst.sshfl [vmem:[#allocation8 + $0x8] sm:$0x33 pattern:$0x76325410] %v2736_v26  ;;  %v3183_v44 = vpack.c.bf16 %v3153_v32, %v3151_v27  ;;  %v3154_v14 = vmax.f32 %v3739_v29, 0.0 }
 0x1b8   :  { %v2751_v18 = vcombine.high %v2743_v35, %v2743_v35  ;;  %v2752_v20 = vcombine.high %v2750_v39, %v2750_v39  ;;  %v2761_v52 = vrot.slane %v2753_v51, %v4440_v55  ;;  %v2768_v21 = vrot.slane %v2754_v28, %v4440_v55  ;;  %3589 = vst.sshfl [vmem:[#allocation8 + $0x10] sm:$0x33 pattern:$0x76325410] %v2753_v51  ;;  %v2634_v30 = vpop.f32.mrb[4].mxu0 }
 0x1b9   :  { %3590 = vst.sshfl [vmem:[#allocation8 + $0x18] sm:$0x33 pattern:$0x76325410] %v2754_v28  ;;  %v3741_v36 = vadd.f32 %v2634_v30, %v2296_v50  ;;  %v2636_v37 = vpop.f32.mrb[5].mxu0  ;;  %v3184_v45 = vpack.c.bf16 %v3154_v14, %v3152_v42  ;;  %v2308_v50 = vadd.f32 %v4852_v58, %v4873_v5  ;;  %v2310_v42 = vadd.f32 %v4854_v59, %v4871_v4 }
 0x1ba   :  { %3088 = vst [vmem:[#allocation8 + $0x4] sm:$0xf] %v2751_v18  ;;  %3090 = vst [vmem:[#allocation8 + $0xc] sm:$0xf] %v2752_v20  ;;  %v2769_v1 = vcombine.high %v2761_v52, %v2761_v52  ;;  %v2770_v13 = vcombine.high %v2768_v21, %v2768_v21  ;;  %v3743_v7 = vadd.f32 %v2636_v37, %v2298_v40  ;;  %v2638_v8 = vpop.f32.mrb[6].mxu0 }
 0x1bb   :  { %v3745_v15 = vadd.f32 %v2638_v8, %v2300_v34  ;;  %3366 = vmatprep.mubr.bf16.mxu1 %v3184_v45  ;;  %v2640_v17 = vpop.f32.mrb[7].mxu0  ;;  %v3155_v49 = vmax.f32 %v3741_v36, 0.0  ;;  %v2312_v58 = vadd.f32 %v4856_v60, %v4873_v5 }
 0x1bc   :  { %3092 = vst [vmem:[#allocation8 + $0x14] sm:$0xf] %v2769_v1  ;;  %3094 = vst [vmem:[#allocation8 + $0x1c] sm:$0xf] %v2770_v13  ;;  %v2771_v47 = vcombine.low %v3741_v36, %v3743_v7  ;;  %v2772_v22 = vcombine.high %v3741_v36, %v3743_v7  ;;  %v3747_v54 = vadd.f32 %v2640_v17, %v2302_v53  ;;  %3367 = vmatmul.mubr.bf16.vlgmr.msra.gmra.mrb[48].mxu1 %v3183_v44 }
 0x1bd   :  { %v3157_v56 = vmax.f32 %v3745_v15, 0.0  ;;  %v3156_v27 = vmax.f32 %v3743_v7, 0.0  ;;  %v2316_v53 = vadd.f32 %v4858_v61, %v4871_v4  ;;  %v2318_v17 = vadd.f32 %v4861_v63, %v4873_v5 }
 0x1be   :  { %v2779_v24 = vrot.slane %v2771_v47, %v4440_v55  ;;  %v2786_v25 = vrot.slane %v2772_v22, %v4440_v55  ;;  %3591 = vst.sshfl [vmem:[#allocation8 + $0x20] sm:$0x33 pattern:$0x76325410] %v2771_v47  ;;  %v2789_v26 = vcombine.low %v3745_v15, %v3747_v54  ;;  %v2790_v29 = vcombine.high %v3745_v15, %v3747_v54 }
 0x1bf   :  { %3592 = vst.sshfl [vmem:[#allocation8 + $0x28] sm:$0x33 pattern:$0x76325410] %v2772_v22  ;;  %v3158_v32 = vmax.f32 %v3747_v54, 0.0  ;;  %v3185_v35 = vpack.c.bf16 %v3157_v56, %v3155_v49  ;;  %v2322_v63 = vadd.f32 %v4869_v3, %v4873_v5 }
 0x1c0   :  { %v2787_v39 = vcombine.high %v2779_v24, %v2779_v24  ;;  %v2788_v51 = vcombine.high %v2786_v25, %v2786_v25  ;;  %v2797_v57 = vrot.slane %v2789_v26, %v4440_v55  ;;  %v2804_v28 = vrot.slane %v2790_v29, %v4440_v55  ;;  %3593 = vst.sshfl [vmem:[#allocation8 + $0x30] sm:$0x33 pattern:$0x76325410] %v2789_v26  ;;  %v2644_v40 = vpop.f32.mrb[8].mxu0 }
 0x1c1   :  { %3594 = vst.sshfl [vmem:[#allocation8 + $0x38] sm:$0x33 pattern:$0x76325410] %v2790_v29  ;;  %v3749_v44 = vadd.f32 %v2644_v40, %v2306_v23  ;;  %v2646_v14 = vpop.f32.mrb[9].mxu0  ;;  %v3186_v18 = vpack.c.bf16 %v3158_v32, %v3156_v27  ;;  %v2320_v25 = vadd.f32 %v4867_v2, %v4871_v4 }
 0x1c2   :  { %3096 = vst [vmem:[#allocation8 + $0x24] sm:$0xf] %v2787_v39  ;;  %3098 = vst [vmem:[#allocation8 + $0x2c] sm:$0xf] %v2788_v51  ;;  %v2805_v20 = vcombine.high %v2797_v57, %v2797_v57  ;;  %v2806_v52 = vcombine.high %v2804_v28, %v2804_v28  ;;  %v3751_v21 = vadd.f32 %v2646_v14, %v2308_v50  ;;  %v2648_v30 = vpop.f32.mrb[10].mxu0 }
 0x1c3   :  { %v3753_v34 = vadd.f32 %v2648_v30, %v2310_v42  ;;  %3374 = vmatprep.mubr.bf16.mxu1 %v3186_v18  ;;  %v2650_v36 = vpop.f32.mrb[11].mxu0  ;;  %v3159_v1 = vmax.f32 %v3749_v44, 0.0 }
 0x1c4   :  { %3100 = vst [vmem:[#allocation8 + $0x34] sm:$0xf] %v2805_v20  ;;  %3102 = vst [vmem:[#allocation8 + $0x3c] sm:$0xf] %v2806_v52  ;;  %v2807_v37 = vcombine.low %v3749_v44, %v3751_v21  ;;  %v2808_v45 = vcombine.high %v3749_v44, %v3751_v21  ;;  %v3755_v59 = vadd.f32 %v2650_v36, %v2312_v58  ;;  %3375 = vmatmul.mubr.bf16.gmra.mrb[52].mxu1 %v3185_v35 }
 0x1c5   :  { %v3161_v60 = vmax.f32 %v3753_v34, 0.0  ;;  %v3160_v47 = vmax.f32 %v3751_v21, 0.0 }
 0x1c6   :  { %v2815_v13 = vrot.slane %v2807_v37, %v4440_v55  ;;  %v2822_v7 = vrot.slane %v2808_v45, %v4440_v55  ;;  %3595 = vst.sshfl [vmem:[#allocation8 + $0x40] sm:$0x33 pattern:$0x76325410] %v2807_v37  ;;  %v2825_v8 = vcombine.low %v3753_v34, %v3755_v59  ;;  %v2826_v15 = vcombine.high %v3753_v34, %v3755_v59 }
 0x1c7   :  { %3596 = vst.sshfl [vmem:[#allocation8 + $0x48] sm:$0x33 pattern:$0x76325410] %v2808_v45  ;;  %v3162_v22 = vmax.f32 %v3755_v59, 0.0  ;;  %v3187_v54 = vpack.c.bf16 %v3161_v60, %v3159_v1 }
 0x1c8   :  { %v2823_v23 = vcombine.high %v2815_v13, %v2815_v13  ;;  %v2824_v49 = vcombine.high %v2822_v7, %v2822_v7  ;;  %v2833_v61 = vrot.slane %v2825_v8, %v4440_v55  ;;  %v2840_v56 = vrot.slane %v2826_v15, %v4440_v55  ;;  %3597 = vst.sshfl [vmem:[#allocation8 + $0x50] sm:$0x33 pattern:$0x76325410] %v2825_v8  ;;  %v2654_v24 = vpop.f32.mrb[12].mxu0 }
 0x1c9   :  { %3598 = vst.sshfl [vmem:[#allocation8 + $0x58] sm:$0x33 pattern:$0x76325410] %v2826_v15  ;;  %v3757_v26 = vadd.f32 %v2654_v24, %v2316_v53  ;;  %v2656_v29 = vpop.f32.mrb[13].mxu0  ;;  %v3188_v50 = vpack.c.bf16 %v3162_v22, %v3160_v47 }
 0x1ca   :  { %3104 = vst [vmem:[#allocation8 + $0x44] sm:$0xf] %v2823_v23  ;;  %3106 = vst [vmem:[#allocation8 + $0x4c] sm:$0xf] %v2824_v49  ;;  %v2841_v27 = vcombine.high %v2833_v61, %v2833_v61  ;;  %v2842_v32 = vcombine.high %v2840_v56, %v2840_v56  ;;  %v3759_v35 = vadd.f32 %v2656_v29, %v2318_v17  ;;  %v2658_v39 = vpop.f32.mrb[14].mxu0 }
 0x1cb   :  { %v3761_v51 = vadd.f32 %v2658_v39, %v2320_v25  ;;  %3382 = vmatprep.mubr.bf16.mxu1 %v3188_v50  ;;  %v2660_v57 = vpop.f32.mrb[15].mxu0  ;;  %v3163_v4 = vmax.f32 %v3757_v26, 0.0 }
 0x1cc   :  { %3108 = vst [vmem:[#allocation8 + $0x54] sm:$0xf] %v2841_v27  ;;  %3110 = vst [vmem:[#allocation8 + $0x5c] sm:$0xf] %v2842_v32  ;;  %v2843_v28 = vcombine.low %v3757_v26, %v3759_v35  ;;  %v2844_v40 = vcombine.high %v3757_v26, %v3759_v35  ;;  %v3763_v2 = vadd.f32 %v2660_v57, %v2322_v63  ;;  %3383 = vmatmul.mubr.bf16.gmra.mrb[56].mxu1 %v3187_v54 }
 0x1cd   :  { %v3165_v42 = vmax.f32 %v3761_v51, 0.0  ;;  %v3164_v18 = vmax.f32 %v3759_v35, 0.0 }
 0x1ce   :  { %v2851_v44 = vrot.slane %v2843_v28, %v4440_v55  ;;  %v2858_v3 = vrot.slane %v2844_v40, %v4440_v55  ;;  %3599 = vst.sshfl [vmem:[#allocation8 + $0x60] sm:$0x33 pattern:$0x76325410] %v2843_v28  ;;  %v2861_v5 = vcombine.low %v3761_v51, %v3763_v2  ;;  %v2862_v14 = vcombine.high %v3761_v51, %v3763_v2 }
 0x1cf   :  { %3600 = vst.sshfl [vmem:[#allocation8 + $0x68] sm:$0x33 pattern:$0x76325410] %v2844_v40  ;;  %v3166_v58 = vmax.f32 %v3763_v2, 0.0  ;;  %v3189_v20 = vpack.c.bf16 %v3165_v42, %v3163_v4 }
 0x1d0   :  { %v2859_v52 = vcombine.high %v2851_v44, %v2851_v44  ;;  %v2860_v21 = vcombine.high %v2858_v3, %v2858_v3  ;;  %v2869_v30 = vrot.slane %v2861_v5, %v4440_v55  ;;  %v2876_v34 = vrot.slane %v2862_v14, %v4440_v55  ;;  %3601 = vst.sshfl [vmem:[#allocation8 + $0x70] sm:$0x33 pattern:$0x76325410] %v2861_v5  ;;  %v2664_v36 = vpop.f32.mrb[32].mxu0 }
 0x1d1   :  { %3602 = vst.sshfl [vmem:[#allocation8 + $0x78] sm:$0x33 pattern:$0x76325410] %v2862_v14  ;;  %v2665_v37 = vadd.f32 %v2664_v36, %v4891_v31  ;;  %v2666_v45 = vpop.f32.mrb[33].mxu0  ;;  %v3190_v59 = vpack.c.bf16 %v3166_v58, %v3164_v18 }
 0x1d2   :  { %3112 = vst [vmem:[#allocation8 + $0x64] sm:$0xf] %v2859_v52  ;;  %3114 = vst [vmem:[#allocation8 + $0x6c] sm:$0xf] %v2860_v21  ;;  %v2877_v53 = vcombine.high %v2869_v30, %v2869_v30  ;;  %v2878_v1 = vcombine.high %v2876_v34, %v2876_v34  ;;  %v2667_v60 = vadd.f32 %v2666_v45, %v4893_v33  ;;  %v2668_v13 = vpop.f32.mrb[34].mxu0 }
 0x1d3   :  { %v2669_v7 = vadd.f32 %v2668_v13, %v4895_v38  ;;  %3390 = vmatprep.mubr.bf16.mxu1 %v3190_v59  ;;  %v2670_v8 = vpop.f32.mrb[35].mxu0  ;;  %v3167_v31 = vmax.f32 %v2665_v37, 0.0 }
 0x1d4   :  { %3116 = vst [vmem:[#allocation8 + $0x74] sm:$0xf] %v2877_v53  ;;  %3118 = vst [vmem:[#allocation8 + $0x7c] sm:$0xf] %v2878_v1  ;;  %v2879_v15 = vcombine.low %v2665_v37, %v2667_v60  ;;  %v2880_v17 = vcombine.high %v2665_v37, %v2667_v60  ;;  %v2671_v47 = vadd.f32 %v2670_v8, %v4897_v16  ;;  %3391 = vmatmul.mubr.bf16.gmra.mrb[60].mxu1 %v3189_v20 }
 0x1d5   :  { %v3169_v22 = vmax.f32 %v2669_v7, 0.0  ;;  %v3168_v38 = vmax.f32 %v2667_v60, 0.0 }
 0x1d6   :  { %v2887_v54 = vrot.slane %v2879_v15, %v4440_v55  ;;  %v2894_v23 = vrot.slane %v2880_v17, %v4440_v55  ;;  %3603 = vst.sshfl [vmem:[#allocation8 + $0x80] sm:$0x33 pattern:$0x76325410] %v2879_v15  ;;  %v2897_v33 = vcombine.low %v2669_v7, %v2671_v47  ;;  %v2898_v49 = vcombine.high %v2669_v7, %v2671_v47 }
 0x1d7   :  { %3604 = vst.sshfl [vmem:[#allocation8 + $0x88] sm:$0x33 pattern:$0x76325410] %v2880_v17  ;;  %v3170_v61 = vmax.f32 %v2671_v47, 0.0  ;;  %v3191_v56 = vpack.c.bf16 %v3169_v22, %v3167_v31 }
 0x1d8   :  { %v2895_v24 = vcombine.high %v2887_v54, %v2887_v54  ;;  %v2896_v25 = vcombine.high %v2894_v23, %v2894_v23  ;;  %v2905_v26 = vrot.slane %v2897_v33, %v4440_v55  ;;  %v2912_v16 = vrot.slane %v2898_v49, %v4440_v55  ;;  %3605 = vst.sshfl [vmem:[#allocation8 + $0x90] sm:$0x33 pattern:$0x76325410] %v2897_v33  ;;  %v2674_v29 = vpop.f32.mrb[36].mxu0 }
 0x1d9   :  { %3606 = vst.sshfl [vmem:[#allocation8 + $0x98] sm:$0x33 pattern:$0x76325410] %v2898_v49  ;;  %v2675_v50 = vadd.f32 %v2674_v29, %v4899_v41  ;;  %v2676_v63 = vpop.f32.mrb[37].mxu0  ;;  %v3192_v27 = vpack.c.bf16 %v3170_v61, %v3168_v38 }
 0x1da   :  { %3120 = vst [vmem:[#allocation8 + $0x84] sm:$0xf] %v2895_v24  ;;  %3122 = vst [vmem:[#allocation8 + $0x8c] sm:$0xf] %v2896_v25  ;;  %v2913_v32 = vcombine.high %v2905_v26, %v2905_v26  ;;  %v2914_v35 = vcombine.high %v2912_v16, %v2912_v16  ;;  %v2677_v39 = vadd.f32 %v2676_v63, %v4901_v43  ;;  %v2678_v51 = vpop.f32.mrb[38].mxu0 }
 0x1db   :  { %v2679_v57 = vadd.f32 %v2678_v51, %v4903_v46  ;;  %3398 = vmatprep.mubr.bf16.mxu1 %v3192_v27  ;;  %v2680_v28 = vpop.f32.mrb[39].mxu0  ;;  %v3171_v41 = vmax.f32 %v2675_v50, 0.0 }
 0x1dc   :  { %3124 = vst [vmem:[#allocation8 + $0x94] sm:$0xf] %v2913_v32  ;;  %3126 = vst [vmem:[#allocation8 + $0x9c] sm:$0xf] %v2914_v35  ;;  %v2915_v40 = vcombine.low %v2675_v50, %v2677_v39  ;;  %v2916_v2 = vcombine.high %v2675_v50, %v2677_v39  ;;  %v2681_v4 = vadd.f32 %v2680_v28, %v4905_v62  ;;  %3399 = vmatmul.mubr.bf16.gmra.mrb[64].mxu1 %v3191_v56 }
 0x1dd   :  { %v3173_v42 = vmax.f32 %v2679_v57, 0.0  ;;  %v3172_v46 = vmax.f32 %v2677_v39, 0.0 }
 0x1de   :  { %v2923_v44 = vrot.slane %v2915_v40, %v4440_v55  ;;  %v2930_v3 = vrot.slane %v2916_v2, %v4440_v55  ;;  %3607 = vst.sshfl [vmem:[#allocation8 + $0xa0] sm:$0x33 pattern:$0x76325410] %v2915_v40  ;;  %v2933_v43 = vcombine.low %v2679_v57, %v2681_v4  ;;  %v2934_v5 = vcombine.high %v2679_v57, %v2681_v4 }
 0x1df   :  { %3608 = vst.sshfl [vmem:[#allocation8 + $0xa8] sm:$0x33 pattern:$0x76325410] %v2916_v2  ;;  %v3174_v14 = vmax.f32 %v2681_v4, 0.0  ;;  %v3193_v18 = vpack.c.bf16 %v3173_v42, %v3171_v41 }
 0x1e0   :  { %v2931_v58 = vcombine.high %v2923_v44, %v2923_v44  ;;  %v2932_v20 = vcombine.high %v2930_v3, %v2930_v3  ;;  %v2941_v52 = vrot.slane %v2933_v43, %v4440_v55  ;;  %v2948_v62 = vrot.slane %v2934_v5, %v4440_v55  ;;  %3609 = vst.sshfl [vmem:[#allocation8 + $0xb0] sm:$0x33 pattern:$0x76325410] %v2933_v43  ;;  %v2684_v21 = vpop.f32.mrb[40].mxu0 }
 0x1e1   :  { %3610 = vst.sshfl [vmem:[#allocation8 + $0xb8] sm:$0x33 pattern:$0x76325410] %v2934_v5  ;;  %v2685_v30 = vadd.f32 %v2684_v21, %v4907_v0  ;;  %v2686_v34 = vpop.f32.mrb[41].mxu0  ;;  %v3194_v36 = vpack.c.bf16 %v3174_v14, %v3172_v46 }
 0x1e2   :  { %3128 = vst [vmem:[#allocation8 + $0xa4] sm:$0xf] %v2931_v58  ;;  %3130 = vst [vmem:[#allocation8 + $0xac] sm:$0xf] %v2932_v20  ;;  %v2949_v37 = vcombine.high %v2941_v52, %v2941_v52  ;;  %v2950_v45 = vcombine.high %v2948_v62, %v2948_v62  ;;  %v2687_v59 = vadd.f32 %v2686_v34, %v4909_v6  ;;  %v2688_v53 = vpop.f32.mrb[42].mxu0 }
 0x1e3   :  { %v2689_v1 = vadd.f32 %v2688_v53, %v4911_v9  ;;  %3406 = vmatprep.mubr.bf16.mxu1 %v3194_v36  ;;  %v2690_v60 = vpop.f32.mrb[43].mxu0  ;;  %v3175_v0 = vmax.f32 %v2685_v30, 0.0  ;;  %v5006_v46 = vld [vmem:[%s5055_s4] ss:$0 sm:$0xff] }
 0x1e4   :  { %3132 = vst [vmem:[#allocation8 + $0xb4] sm:$0xf] %v2949_v37  ;;  %3134 = vst [vmem:[#allocation8 + $0xbc] sm:$0xf] %v2950_v45  ;;  %v2951_v13 = vcombine.low %v2685_v30, %v2687_v59  ;;  %v2952_v7 = vcombine.high %v2685_v30, %v2687_v59  ;;  %v2691_v8 = vadd.f32 %v2690_v60, %v4913_v10  ;;  %3407 = vmatmul.mubr.bf16.gmra.mrb[68].mxu1 %v3193_v18 }
 0x1e5   :  { %v3177_v15 = vmax.f32 %v2689_v1, 0.0  ;;  %v3176_v9 = vmax.f32 %v2687_v59, 0.0 }
 0x1e6   :  { %v2959_v17 = vrot.slane %v2951_v13, %v4440_v55  ;;  %v2966_v47 = vrot.slane %v2952_v7, %v4440_v55  ;;  %3611 = vst.sshfl [vmem:[#allocation8 + $0xc0] sm:$0x33 pattern:$0x76325410] %v2951_v13  ;;  %v2969_v6 = vcombine.low %v2689_v1, %v2691_v8  ;;  %v2970_v31 = vcombine.high %v2689_v1, %v2691_v8 }
 0x1e7   :  { %3612 = vst.sshfl [vmem:[#allocation8 + $0xc8] sm:$0x33 pattern:$0x76325410] %v2952_v7  ;;  %v3178_v22 = vmax.f32 %v2691_v8, 0.0  ;;  %v3195_v54 = vpack.c.bf16 %v3177_v15, %v3175_v0 }
 0x1e8   :  { %v2967_v23 = vcombine.high %v2959_v17, %v2959_v17  ;;  %v2968_v33 = vcombine.high %v2966_v47, %v2966_v47  ;;  %v2977_v49 = vrot.slane %v2969_v6, %v4440_v55  ;;  %v2984_v10 = vrot.slane %v2970_v31, %v4440_v55  ;;  %3613 = vst.sshfl [vmem:[#allocation8 + $0xd0] sm:$0x33 pattern:$0x76325410] %v2969_v6  ;;  %v2694_v38 = vpop.f32.mrb[44].mxu0 }
 0x1e9   :  { %3614 = vst.sshfl [vmem:[#allocation8 + $0xd8] sm:$0x33 pattern:$0x76325410] %v2970_v31  ;;  %v2695_v61 = vadd.f32 %v2694_v38, %v4917_v11  ;;  %v2696_v56 = vpop.f32.mrb[45].mxu0  ;;  %v3196_v24 = vpack.c.bf16 %v3178_v22, %v3176_v9 }
 0x1ea   :  { %3136 = vst [vmem:[#allocation8 + $0xc4] sm:$0xf] %v2967_v23  ;;  %3138 = vst [vmem:[#allocation8 + $0xcc] sm:$0xf] %v2968_v33  ;;  %v2985_v25 = vcombine.high %v2977_v49, %v2977_v49  ;;  %v2986_v26 = vcombine.high %v2984_v10, %v2984_v10  ;;  %v2697_v16 = vadd.f32 %v2696_v56, %v4921_v12  ;;  %v2698_v29 = vpop.f32.mrb[46].mxu0 }
 0x1eb   :  { %v2699_v50 = vadd.f32 %v2698_v29, %v4925_v48  ;;  %3414 = vmatprep.mubr.bf16.mxu1 %v3196_v24  ;;  %v2700_v63 = vpop.f32.mrb[47].mxu0  ;;  %v3179_v11 = vmax.f32 %v2695_v61, 0.0 }
 0x1ec   :  { %3140 = vst [vmem:[#allocation8 + $0xd4] sm:$0xf] %v2985_v25  ;;  %3142 = vst [vmem:[#allocation8 + $0xdc] sm:$0xf] %v2986_v26  ;;  %v2987_v27 = vcombine.low %v2695_v61, %v2697_v16  ;;  %v2988_v32 = vcombine.high %v2695_v61, %v2697_v16  ;;  %v2701_v35 = vadd.f32 %v2700_v63, %v4929_v19  ;;  %3415 = vmatmul.mubr.bf16.gmra.mrb[72].mxu1 %v3195_v54 }
 0x1ed   :  { %v3181_v39 = vmax.f32 %v2699_v50, 0.0  ;;  %v3180_v48 = vmax.f32 %v2697_v16, 0.0 }
 0x1ee   :  { %v2995_v51 = vrot.slane %v2987_v27, %v4440_v55  ;;  %v3002_v57 = vrot.slane %v2988_v32, %v4440_v55  ;;  %3615 = vst.sshfl [vmem:[#allocation8 + $0xe0] sm:$0x33 pattern:$0x76325410] %v2987_v27  ;;  %v3005_v12 = vcombine.low %v2699_v50, %v2701_v35  ;;  %v3006_v28 = vcombine.high %v2699_v50, %v2701_v35 }
 0x1ef   :  { %3616 = vst.sshfl [vmem:[#allocation8 + $0xe8] sm:$0x33 pattern:$0x76325410] %v2988_v32  ;;  %v3182_v40 = vmax.f32 %v2701_v35, 0.0  ;;  %v3197_v2 = vpack.c.bf16 %v3181_v39, %v3179_v11 }
 0x1f0   :  { %v3003_v4 = vcombine.high %v2995_v51, %v2995_v51  ;;  %v3004_v41 = vcombine.high %v3002_v57, %v3002_v57  ;;  %v3013_v42 = vrot.slane %v3005_v12, %v4440_v55  ;;  %v3020_v19 = vrot.slane %v3006_v28, %v4440_v55  ;;  %3617 = vst.sshfl [vmem:[#allocation8 + $0xf0] sm:$0x33 pattern:$0x76325410] %v3005_v12 }
 0x1f1   :  { %3618 = vst.sshfl [vmem:[#allocation8 + $0xf8] sm:$0x33 pattern:$0x76325410] %v3006_v28  ;;  %v3198_v44 = vpack.c.bf16 %v3182_v40, %v3180_v48 }
 0x1f2   :  { %3144 = vst [vmem:[#allocation8 + $0xe4] sm:$0xf] %v3003_v4  ;;  %3146 = vst [vmem:[#allocation8 + $0xec] sm:$0xf] %v3004_v41  ;;  %v3021_v3 = vcombine.high %v3013_v42, %v3013_v42  ;;  %v3022_v43 = vcombine.high %v3020_v19, %v3020_v19 }
 0x1f3   :  { %3422 = vmatprep.mubr.bf16.mxu1 %v3198_v44 }
 0x1f4   :  { %3148 = vst [vmem:[#allocation8 + $0xf4] sm:$0xf] %v3021_v3  ;;  %3150 = vst [vmem:[#allocation8 + $0xfc] sm:$0xf] %v3022_v43  ;;  %3423 = vmatmul.mubr.bf16.gmra.mrb[76].mxu1 %v3197_v2 }
 0x28f   :  { %v3652_v5 = vpop.f32.mrb[48].mxu1 }
 0x290   :  { %v3653_v14 = vpop.f32.mrb[49].mxu1 }
 0x291   :  { %v3654_v18 = vadd.f32 %v3653_v14, %v3652_v5  ;;  %v3655_v55 = vpop.f32.mrb[50].mxu1 }
 0x292   :  { %v3656_v58 = vpop.f32.mrb[51].mxu1 }
 0x293   :  { %v3369_v20 = vadd.f32 %v3654_v18, %v5006_v46  ;;  %v3657_v52 = vadd.f32 %v3656_v58, %v3655_v55 }
 0x295   :  { %3431 = vst [vmem:[#allocation9] sm:$0xff] %v3369_v20  ;;  %v3372_v62 = vadd.f32 %v3657_v52, %v5006_v46 }
 0x297   :  { %3432 = vst [vmem:[#allocation9 + $0x8] sm:$0xff] %v3372_v62  ;;  %v3658_v21 = vpop.f32.mrb[52].mxu1 }
 0x298   :  { %v3659_v30 = vpop.f32.mrb[53].mxu1 }
 0x299   :  { %v3660_v34 = vadd.f32 %v3659_v30, %v3658_v21  ;;  %v3661_v36 = vpop.f32.mrb[54].mxu1 }
 0x29a   :  { %v3662_v37 = vpop.f32.mrb[55].mxu1 }
 0x29b   :  { %v3377_v45 = vadd.f32 %v3660_v34, %v5006_v46  ;;  %v3663_v59 = vadd.f32 %v3662_v37, %v3661_v36 }
 0x29d   :  { %3433 = vst [vmem:[#allocation9 + $0x10] sm:$0xff] %v3377_v45  ;;  %v3380_v53 = vadd.f32 %v3663_v59, %v5006_v46 }
 0x29f   :  { %3434 = vst [vmem:[#allocation9 + $0x18] sm:$0xff] %v3380_v53  ;;  %v3664_v1 = vpop.f32.mrb[56].mxu1 }
 0x2a0   :  { %v3665_v60 = vpop.f32.mrb[57].mxu1 }
 0x2a1   :  { %v3666_v13 = vadd.f32 %v3665_v60, %v3664_v1  ;;  %v3667_v7 = vpop.f32.mrb[58].mxu1 }
 0x2a2   :  { %v3668_v8 = vpop.f32.mrb[59].mxu1 }
 0x2a3   :  { %v3385_v0 = vadd.f32 %v3666_v13, %v5006_v46  ;;  %v3669_v15 = vadd.f32 %v3668_v8, %v3667_v7 }
 0x2a5   :  { %3435 = vst [vmem:[#allocation9 + $0x20] sm:$0xff] %v3385_v0  ;;  %v3388_v17 = vadd.f32 %v3669_v15, %v5006_v46 }
 0x2a7   :  { %3436 = vst [vmem:[#allocation9 + $0x28] sm:$0xff] %v3388_v17  ;;  %v3670_v47 = vpop.f32.mrb[60].mxu1 }
 0x2a8   :  { %v3671_v6 = vpop.f32.mrb[61].mxu1 }
 0x2a9   :  { %v3672_v31 = vadd.f32 %v3671_v6, %v3670_v47  ;;  %v3673_v9 = vpop.f32.mrb[62].mxu1 }
 0x2aa   :  { %v3674_v22 = vpop.f32.mrb[63].mxu1 }
 0x2ab   :  { %v3393_v54 = vadd.f32 %v3672_v31, %v5006_v46  ;;  %v3675_v23 = vadd.f32 %v3674_v22, %v3673_v9 }
 0x2ad   :  { %3437 = vst [vmem:[#allocation9 + $0x30] sm:$0xff] %v3393_v54  ;;  %v3396_v33 = vadd.f32 %v3675_v23, %v5006_v46 }
 0x2af   :  { %3438 = vst [vmem:[#allocation9 + $0x38] sm:$0xff] %v3396_v33  ;;  %v3676_v49 = vpop.f32.mrb[64].mxu1 }
 0x2b0   :  { %v3677_v10 = vpop.f32.mrb[65].mxu1 }
 0x2b1   :  { %v3678_v38 = vadd.f32 %v3677_v10, %v3676_v49  ;;  %v3679_v61 = vpop.f32.mrb[66].mxu1 }
 0x2b2   :  { %v3680_v56 = vpop.f32.mrb[67].mxu1 }
 0x2b3   :  { %v3401_v24 = vadd.f32 %v3678_v38, %v5006_v46  ;;  %v3681_v25 = vadd.f32 %v3680_v56, %v3679_v61 }
 0x2b5   :  { %3439 = vst [vmem:[#allocation9 + $0x40] sm:$0xff] %v3401_v24  ;;  %v3404_v26 = vadd.f32 %v3681_v25, %v5006_v46 }
 0x2b7   :  { %3440 = vst [vmem:[#allocation9 + $0x48] sm:$0xff] %v3404_v26  ;;  %v3682_v16 = vpop.f32.mrb[68].mxu1 }
 0x2b8   :  { %v3683_v29 = vpop.f32.mrb[69].mxu1 }
 0x2b9   :  { %v3684_v50 = vadd.f32 %v3683_v29, %v3682_v16  ;;  %v3685_v63 = vpop.f32.mrb[70].mxu1 }
 0x2ba   :  { %v3686_v27 = vpop.f32.mrb[71].mxu1 }
 0x2bb   :  { %v3409_v32 = vadd.f32 %v3684_v50, %v5006_v46  ;;  %v3687_v35 = vadd.f32 %v3686_v27, %v3685_v63 }
 0x2bd   :  { %3441 = vst [vmem:[#allocation9 + $0x50] sm:$0xff] %v3409_v32  ;;  %v3412_v11 = vadd.f32 %v3687_v35, %v5006_v46 }
 0x2bf   :  { %3442 = vst [vmem:[#allocation9 + $0x58] sm:$0xff] %v3412_v11  ;;  %v3688_v39 = vpop.f32.mrb[72].mxu1 }
 0x2c0   :  { %v3689_v51 = vpop.f32.mrb[73].mxu1 }
 0x2c1   :  { %v3690_v57 = vadd.f32 %v3689_v51, %v3688_v39  ;;  %v3691_v12 = vpop.f32.mrb[74].mxu1 }
 0x2c2   :  { %v3692_v28 = vpop.f32.mrb[75].mxu1 }
 0x2c3   :  { %v3417_v48 = vadd.f32 %v3690_v57, %v5006_v46  ;;  %v3693_v40 = vadd.f32 %v3692_v28, %v3691_v12 }
 0x2c5   :  { %3443 = vst [vmem:[#allocation9 + $0x60] sm:$0xff] %v3417_v48  ;;  %v3420_v2 = vadd.f32 %v3693_v40, %v5006_v46 }
 0x2c7   :  { %3444 = vst [vmem:[#allocation9 + $0x68] sm:$0xff] %v3420_v2  ;;  %v3694_v4 = vpop.f32.mrb[76].mxu1 }
 0x2c8   :  { %v3695_v41 = vpop.f32.mrb[77].mxu1 }
 0x2c9   :  { %v3696_v42 = vadd.f32 %v3695_v41, %v3694_v4  ;;  %v3697_v19 = vpop.f32.mrb[78].mxu1 }
 0x2ca   :  { %v3698_v44 = vpop.f32.mrb[79].mxu1 }
 0x2cb   :  { %v3425_v3 = vadd.f32 %v3696_v42, %v5006_v46  ;;  %v3699_v43 = vadd.f32 %v3698_v44, %v3697_v19 }
 0x2cd   :  { %3445 = vst [vmem:[#allocation9 + $0x70] sm:$0xff] %v3425_v3  ;;  %v3428_v5 = vadd.f32 %v3699_v43, %v5006_v46 }
 0x2cf   :  { %3446 = vst [vmem:[#allocation9 + $0x78] sm:$0xff] %v3428_v5 }
 0x2d0   :  { %3451 = vsyncadd [#allocation4], 4032  ;;  %s4359_s4 = smov [#allocation8]  }
 0x2d1   :  { %s3452_s16 = sshll.u32 %s4359_s4, 4  ;;  %s3453_s16 = int_to_ptr.vmem [resolvable:$true] %s3452_s16 }
 0x2d2   :  { %s4296_s17 = scalar_lea.vmem %s3453_s16, 64  ;;  %s4300_s18 = scalar_lea.vmem %s3453_s16, 4096 }
 0x2d3   :  { %p4297_p10 = scmp.ne.s32.totalorder %s3453_s16, %s4296_s17  ;;  %p4301_p11 = scmp.lt.s32.totalorder %s3453_s16, %s3453_s16 }
 0x2d4   :  { %p4302_p12 = scmp.lt.s32.totalorder %s4300_s18, %s4296_s17 }
 0x2d6   :  { %p4303_p13 = por %p4302_p12, %p4301_p11 }
 0x2d8   :  { %p4304_p0 = pnand %p4303_p13, %p4297_p10 }
 0x2da   :  { %4307 = shalt.err (!%p4304_p0)
}
 0x2db   :  { %s4308_s1 = scalar_lea.hbm %s5056_s5, 64 }
 0x2dc   :  { %p4309_p1 = scmp.ne.s32.totalorder %s5056_s5, %s4308_s1  ;;  %p4312_p2 = scmp.lt.u32.totalorder %s4308_s1, %s5056_s5 }
 0x2de   :  { %p4314_p3 = pnand %p4312_p2, %p4309_p1 }
 0x2e0   :  { %4317 = shalt.err (!%p4314_p3)
}
 0x2e1   :  { %3458 = dma.vmem_to_hbm [thread:$0]  %s3453_s16, 64, %s5056_s5, [#allocation4], %s4355_s0, %s4355_s0, %s4356_s11  }
 0x2e2   :  { %3463 = vsyncadd [#allocation10], 2016  ;;  %s4360_s27 = smov [#allocation9]  }
 0x2e3   :  { %s3464_s28 = sshll.u32 %s4360_s27, 4  ;;  %s3465_s28 = int_to_ptr.vmem [resolvable:$true] %s3464_s28 }
 0x2e4   :  { %s4318_s29 = scalar_lea.vmem %s3465_s28, 32  ;;  %s4322_s30 = scalar_lea.vmem %s3465_s28, 2048 }
 0x2e5   :  { %p4319_p4 = scmp.ne.s32.totalorder %s3465_s28, %s4318_s29  ;;  %p4323_p5 = scmp.lt.s32.totalorder %s3465_s28, %s3465_s28 }
 0x2e6   :  { %p4324_p6 = scmp.lt.s32.totalorder %s4322_s30, %s4318_s29 }
 0x2e8   :  { %p4325_p7 = por %p4324_p6, %p4323_p5 }
 0x2ea   :  { %p4326_p8 = pnand %p4325_p7, %p4319_p4 }
 0x2ec   :  { %4329 = shalt.err (!%p4326_p8)
}
 0x2ed   :  { %s4330_s9 = scalar_lea.hbm %s5057_s6, 32 }
 0x2ee   :  { %p4331_p9 = scmp.ne.s32.totalorder %s5057_s6, %s4330_s9  ;;  %p4334_p10 = scmp.lt.u32.totalorder %s4330_s9, %s5057_s6 }
 0x2f0   :  { %p4336_p11 = pnand %p4334_p10, %p4331_p9 }
 0x2f2   :  { %4339 = shalt.err (!%p4336_p11)
}
 0x2f3   :  { %s4361_s11 = smov 32   ;;  %s4362_s13 = smov 2  }
 0x2f4   :  { %3470 = dma.vmem_to_hbm [thread:$0]  %s3465_s28, 32, %s5057_s6, [#allocation10], %s4361_s11, %s4361_s11, %s4362_s13  }
 0x2f5   :  { %4344 = dma.done.wait [#allocation4], 4096  }
 0x2f6   :  { %4345 = vsyncadd [#allocation4], 4294963200 }
 0x2f7   :  { %4346 = dma.done.wait [#allocation10], 2048  }
 0x2f8   :  { %4347 = vsyncadd [#allocation10], 4294965248 }
 0x2f9   :  { %3477 = vsyncpa [#allocation3], 1 }
 0x2fa   :  { %3478 = vsyncpa [#allocation6], 1 }
 0x2fb   :  { %3479 = vsyncpa [#allocation4], 1 }
 0x2fc   :  { %3480 = vsyncpa [#allocation10], 1 }

</bundles_post_ra>
